<compile_context>
chip_gen: v7x
topology: tpu7x:2x2x1
jax: 0.10.0
libtpu: 0.0.40
codegen_flags: <defaults>
</compile_context>

<pallas_src>
import jax
import jax.numpy as jnp
from jax import lax
from jax.experimental import pallas as pl
from jax.experimental.pallas import tpu as pltpu


def _encoder_lstm_kernel(ids_ref,                       # (T,) int32, SMEM
                         emb_ref,                       # (V, HC) f32, VMEM (resident)
                         w_ih_ref, w_hh_ref,            # (HC, 4HC) bf16 each, VMEM
                         b_ref,                         # (1, 4HC) f32 (b_ih + b_hh)
                         h0_ref, c0_ref,                # (1, HC) f32
                         out_ref,                       # (T, HC) f32  (all h_t)
                         c_out_ref,                     # (1, HC) f32  (final cell)
                         x_sc,                          # (T, HC) f32 scratch
                         xproj_sc,                      # (T, 4HC) f32 scratch
                         h_sc, c_sc):                   # (1, HC) f32 state scratch
    t_len = out_ref.shape[0]
    hc = h0_ref.shape[-1]

    # --- 1) Embedding gather: table is resident in VMEM, ids come from SMEM.
    def gather_body(t, carry):
        idx = ids_ref[t]
        x_sc[pl.ds(t, 1), :] = emb_ref[pl.ds(idx, 1), :]
        return carry

    lax.fori_loop(0, t_len, gather_body, 0, unroll=True)

    # --- 2) Hoisted input projection: one (T, HC) x (HC, 4HC) MXU matmul,
    #        bias folded in once (not per step).
    xproj_sc[...] = (
        jnp.dot(x_sc[...].astype(jnp.bfloat16), w_ih_ref[...],
                preferred_element_type=jnp.float32)
        + b_ref[...])

    # --- 3) Serial recurrence: only h @ W_hh^T + gate math per step.
    h_sc[...] = h0_ref[...]
    c_sc[...] = c0_ref[...]

    def step_body(t, carry):
        h = h_sc[...]
        c = c_sc[...]
        gates = xproj_sc[pl.ds(t, 1), :] + jnp.dot(
            h.astype(jnp.bfloat16), w_hh_ref[...],
            preferred_element_type=jnp.float32)
        # Gate slices land on 128-lane boundaries (HC is a multiple of 128).
        i_g = jax.nn.sigmoid(gates[:, 0 * hc:1 * hc])
        f_g = jax.nn.sigmoid(gates[:, 1 * hc:2 * hc])
        g_g = jnp.tanh(gates[:, 2 * hc:3 * hc])
        o_g = jax.nn.sigmoid(gates[:, 3 * hc:4 * hc])
        c_new = f_g * c + i_g * g_g
        h_new = o_g * jnp.tanh(c_new)
        h_sc[...] = h_new
        c_sc[...] = c_new
        out_ref[pl.ds(t, 1), :] = h_new      # VMEM write; HBM slab DMA once at end
        return carry

    lax.fori_loop(0, t_len, step_body, 0, unroll=True)

    # Final cell state written exactly once.
    c_out_ref[...] = c_sc[...]


def encoder_lstm_sequence_pallas(params, input_ids, h0, c0):
    """Run the fused embedding+LSTM over a whole sequence in ONE pallas_call.

    input_ids: (T,) int32 token indices.
    h0, c0:    (1, HC) f32 initial states (HC a multiple of 128, possibly padded).
    Returns (out_seq (T, HC) f32, c_final (1, HC) f32).
    """
    emb = params["embedding"]            # (V, HC)   f32
    w_ih = params["w_ih_t"]              # (HC, 4HC) bf16
    w_hh = params["w_hh_t"]              # (HC, 4HC) bf16
    b = params["b"]                      # (1, 4HC)  f32
    hc = emb.shape[-1]
    t_len = int(input_ids.shape[0])
    ids = input_ids.astype(jnp.int32)

    vmem = pltpu.MemorySpace.VMEM
    out_seq, c_final = pl.pallas_call(
        _encoder_lstm_kernel,
        out_shape=(jax.ShapeDtypeStruct((t_len, hc), jnp.float32),
                   jax.ShapeDtypeStruct((1, hc), jnp.float32)),
        in_specs=[
            pl.BlockSpec(memory_space=pltpu.MemorySpace.SMEM),   # ids
            pl.BlockSpec(memory_space=vmem),                     # embedding (resident)
            pl.BlockSpec(memory_space=vmem),                     # W_ih^T
            pl.BlockSpec(memory_space=vmem),                     # W_hh^T
            pl.BlockSpec(memory_space=vmem),                     # bias
            pl.BlockSpec(memory_space=vmem),                     # h0
            pl.BlockSpec(memory_space=vmem),                     # c0
        ],
        out_specs=(pl.BlockSpec(memory_space=vmem),
                   pl.BlockSpec(memory_space=vmem)),
        scratch_shapes=[
            pltpu.VMEM((t_len, hc), jnp.float32),        # gathered embeddings
            pltpu.VMEM((t_len, 4 * hc), jnp.float32),    # hoisted X @ W_ih^T + b
            pltpu.VMEM((1, hc), jnp.float32),            # h state
            pltpu.VMEM((1, hc), jnp.float32),            # c state
        ],
    )(ids, emb, w_ih, w_hh, b, h0.reshape(1, hc), c0.reshape(1, hc))
    return out_seq, c_final


def init_encoder_params(key, vocab_size, hidden_size, condition_size):
    """Unpadded parameters at the true HC = hidden_size + condition_size."""
    hc = hidden_size + condition_size
    k_emb, k_wih, k_whh, k_bih, k_bhh = jax.random.split(key, 5)
    scale = 1.0 / jnp.sqrt(hc)
    w_ih_t = jax.random.uniform(k_wih, (hc, 4 * hc), jnp.float32, -scale, scale)
    w_hh_t = jax.random.uniform(k_whh, (hc, 4 * hc), jnp.float32, -scale, scale)
    b_ih = jax.random.uniform(k_bih, (4 * hc,), jnp.float32, -scale, scale)
    b_hh = jax.random.uniform(k_bhh, (4 * hc,), jnp.float32, -scale, scale)
    return {
        "embedding": jax.random.normal(k_emb, (vocab_size, hc), jnp.float32),
        # PyTorch stores (4*HC, HC); kernel uses transposed bf16 copies.
        "w_ih_t": w_ih_t.astype(jnp.bfloat16),
        "w_hh_t": w_hh_t.astype(jnp.bfloat16),
        "b": (b_ih + b_hh).reshape(1, 4 * hc),
    }


def pad_encoder_params(params, hc, hc_p):
    """Zero-pad HC -> hc_p (multiple of 128), preserving the per-gate layout.

    Pad lanes stay exactly zero through the LSTM cell provided h0/c0 pad lanes
    start at zero (gates pad = 0 -> i=f=o=0.5, g=0 -> c_pad, h_pad stay 0).
    """
    assert hc_p % 128 == 0 and hc_p >= hc
    pad = hc_p - hc

    def pad_gate_cols(a):  # (R, 4*hc) -> (R, 4*hc_p), each gate block padded
        parts = [jnp.pad(a[:, g * hc:(g + 1) * hc], ((0, 0), (0, pad)))
                 for g in range(4)]
        return jnp.concatenate(parts, axis=-1)

    return {
        "embedding": jnp.pad(params["embedding"], ((0, 0), (0, pad))),
        "w_ih_t": jnp.pad(pad_gate_cols(params["w_ih_t"]), ((0, pad), (0, 0))),
        "w_hh_t": jnp.pad(pad_gate_cols(params["w_hh_t"]), ((0, pad), (0, 0))),
        "b": pad_gate_cols(params["b"]),
    }


def encoder_rnn_forward(params, input_id, hidden):
    """Mirrors EncoderRNN.forward for one token: returns (output, (h_n, c_n))."""
    h0, c0 = hidden
    hc = params["embedding"].shape[-1]
    ids = jnp.reshape(input_id, (1,)).astype(jnp.int32)
    out_seq, c_final = encoder_lstm_sequence_pallas(
        params, ids, h0.reshape(1, hc), c0.reshape(1, hc))
    output = out_seq.reshape(1, 1, hc)
    return output, (out_seq[-1:].reshape(1, 1, hc), c_final.reshape(1, 1, hc))


def encoder_rnn_encode_sequence(params, input_ids, hidden):
    """Applies the module step-by-step over a whole sequence in one kernel."""
    h0, c0 = hidden
    hc = params["embedding"].shape[-1]
    out_seq, c_final = encoder_lstm_sequence_pallas(
        params, input_ids, h0.reshape(1, hc), c0.reshape(1, hc))
    t_len = input_ids.shape[0]
    return (out_seq.reshape(t_len, 1, hc),
            (out_seq[-1:].reshape(1, 1, hc), c_final.reshape(1, 1, hc)))


def encoder_rnn_reference(params, input_ids, hidden):
    """Pure-JAX reference (same bf16 matmul / f32 gate math) for verification."""
    h0, c0 = hidden
    hc = params["embedding"].shape[-1]
    h = h0.reshape(1, hc).astype(jnp.float32)
    c = c0.reshape(1, hc).astype(jnp.float32)
    outs = []
    for tok in input_ids:
        x = params["embedding"][tok].reshape(1, hc)
        gates = (jnp.dot(x.astype(jnp.bfloat16), params["w_ih_t"],
                         preferred_element_type=jnp.float32) + params["b"])
        gates = gates + jnp.dot(h.astype(jnp.bfloat16), params["w_hh_t"],
                                preferred_element_type=jnp.float32)
        i_g = jax.nn.sigmoid(gates[:, 0 * hc:1 * hc])
        f_g = jax.nn.sigmoid(gates[:, 1 * hc:2 * hc])
        g_g = jnp.tanh(gates[:, 2 * hc:3 * hc])
        o_g = jax.nn.sigmoid(gates[:, 3 * hc:4 * hc])
        c = f_g * c + i_g * g_g
        h = o_g * jnp.tanh(c)
        outs.append(h)
    return jnp.concatenate(outs, axis=0), (h, c)


if __name__ == "__main__":
    vocab_size = 28
    seq_len = 8
    key = jax.random.PRNGKey(0)
    input_ids = jax.random.randint(jax.random.PRNGKey(1), (seq_len,),
                                   0, vocab_size, dtype=jnp.int32)

    # ---------------- Config A: lane-aligned demo (hidden=124, cond=4 -> HC=128)
    hidden_a, cond_a = 124, 4
    hc_a = hidden_a + cond_a
    params_a = init_encoder_params(key, vocab_size, hidden_a, cond_a)
    h0_a = jnp.zeros((1, 1, hc_a), jnp.float32)
    c0_a = jnp.zeros((1, 1, hc_a), jnp.float32)

    seq_fn = jax.jit(encoder_rnn_encode_sequence)
    out_seq, (h_n, c_n) = seq_fn(params_a, input_ids, (h0_a, c0_a))
    jax.block_until_ready((out_seq, h_n, c_n))

    ref_seq, (ref_h, ref_c) = encoder_rnn_reference(params_a, input_ids,
                                                    (h0_a, c0_a))
    assert out_seq.shape == (seq_len, 1, hc_a)
    assert h_n.shape == (1, 1, hc_a) and c_n.shape == (1, 1, hc_a)
    assert jnp.allclose(out_seq.reshape(seq_len, hc_a), ref_seq,
                        atol=1e-3, rtol=1e-3)
    assert jnp.allclose(h_n.reshape(1, hc_a), ref_h, atol=1e-3, rtol=1e-3)
    assert jnp.allclose(c_n.reshape(1, hc_a), ref_c, atol=1e-3, rtol=1e-3)

    # Single-token forward, mirroring the PyTorch module's forward() exactly.
    out1, (h1, c1) = jax.jit(encoder_rnn_forward)(params_a, input_ids[0],
                                                  (h0_a, c0_a))
    jax.block_until_ready((out1, h1, c1))
    assert out1.shape == (1, 1, hc_a)
    assert jnp.allclose(out1.reshape(1, hc_a), ref_seq[:1], atol=1e-3, rtol=1e-3)

    # ---------------- Config B: real module shapes (hidden=256, cond=4 -> HC=260),
    # zero-padded to HC=384 for lane density.  Verifies the padded path.
    hidden_b, cond_b = 256, 4
    hc_b = hidden_b + cond_b
    hc_bp = 384
    params_b = init_encoder_params(jax.random.PRNGKey(2), vocab_size,
                                   hidden_b, cond_b)
    params_bp = pad_encoder_params(params_b, hc_b, hc_bp)
    h0_bp = jnp.zeros((1, hc_bp), jnp.float32)
    c0_bp = jnp.zeros((1, hc_bp), jnp.float32)

    out_bp, c_bp = jax.jit(encoder_lstm_sequence_pallas)(
        params_bp, input_ids, h0_bp, c0_bp)
    jax.block_until_ready((out_bp, c_bp))

    ref_b, (ref_hb, ref_cb) = encoder_rnn_reference(
        params_b, input_ids,
        (jnp.zeros((1, hc_b), jnp.float32), jnp.zeros((1, hc_b), jnp.float32)))
    assert jnp.allclose(out_bp[:, :hc_b], ref_b, atol=1e-3, rtol=1e-3)
    assert jnp.allclose(c_bp[:, :hc_b], ref_cb, atol=1e-3, rtol=1e-3)
    # Pad lanes must stay exactly zero through the recurrence.
    assert jnp.all(out_bp[:, hc_b:] == 0.0)
    assert jnp.all(c_bp[:, hc_b:] == 0.0)

    print("KERNEL_OK")
</pallas_src>

<mosaic_0001>
module attributes {stable_mosaic.version = 11 : i64} {
  func.func @_encoder_lstm_kernel(%arg0: memref<8xi32, #tpu.memory_space<smem>>, %arg1: memref<28x128xf32, #tpu.memory_space<vmem>>, %arg2: memref<128x512xbf16, #tpu.memory_space<vmem>>, %arg3: memref<128x512xbf16, #tpu.memory_space<vmem>>, %arg4: memref<1x512xf32, #tpu.memory_space<vmem>>, %arg5: memref<1x128xf32, #tpu.memory_space<vmem>>, %arg6: memref<1x128xf32, #tpu.memory_space<vmem>>, %arg7: memref<8x128xf32, #tpu.memory_space<vmem>>, %arg8: memref<1x128xf32, #tpu.memory_space<vmem>>, %arg9: memref<8x128xf32, #tpu.memory_space<vmem>>, %arg10: memref<8x512xf32, #tpu.memory_space<vmem>>, %arg11: memref<1x128xf32, #tpu.memory_space<vmem>>, %arg12: memref<1x128xf32, #tpu.memory_space<vmem>>) attributes {dimension_semantics = [], scalar_prefetch = 0 : i64, scratch_operands = 4 : i64, tpu.core_type = #tpu.core_type<tc>} {
    %c0_i32 = arith.constant 0 : i32
    %0 = arith.index_cast %c0_i32 : i32 to index
    %1 = memref.load %arg0[%0] : memref<8xi32, #tpu.memory_space<smem>>
    %2 = arith.index_cast %1 : i32 to index
    %c0 = arith.constant 0 : index
    %3 = vector.load %arg1[%2, %c0] : memref<28x128xf32, #tpu.memory_space<vmem>>, vector<1x128xf32>
    %4 = arith.index_cast %c0_i32 : i32 to index
    %c0_0 = arith.constant 0 : index
    %5 = vector.load %arg9[%4, %c0_0] : memref<8x128xf32, #tpu.memory_space<vmem>>, vector<1x128xf32>
    tpu.vector_store %arg9[%4, %c0_0], %3 {strides = array<i32>} : memref<8x128xf32, #tpu.memory_space<vmem>>, vector<1x128xf32>,
    %c1_i32 = arith.constant 1 : i32
    %6 = arith.index_cast %c1_i32 : i32 to index
    %7 = memref.load %arg0[%6] : memref<8xi32, #tpu.memory_space<smem>>
    %8 = arith.index_cast %7 : i32 to index
    %c0_1 = arith.constant 0 : index
    %9 = vector.load %arg1[%8, %c0_1] : memref<28x128xf32, #tpu.memory_space<vmem>>, vector<1x128xf32>
    %10 = arith.index_cast %c1_i32 : i32 to index
    %c0_2 = arith.constant 0 : index
    %11 = vector.load %arg9[%10, %c0_2] : memref<8x128xf32, #tpu.memory_space<vmem>>, vector<1x128xf32>
    tpu.vector_store %arg9[%10, %c0_2], %9 {strides = array<i32>} : memref<8x128xf32, #tpu.memory_space<vmem>>, vector<1x128xf32>,
    %c2_i32 = arith.constant 2 : i32
    %12 = arith.index_cast %c2_i32 : i32 to index
    %13 = memref.load %arg0[%12] : memref<8xi32, #tpu.memory_space<smem>>
    %14 = arith.index_cast %13 : i32 to index
    %c0_3 = arith.constant 0 : index
    %15 = vector.load %arg1[%14, %c0_3] : memref<28x128xf32, #tpu.memory_space<vmem>>, vector<1x128xf32>
    %16 = arith.index_cast %c2_i32 : i32 to index
    %c0_4 = arith.constant 0 : index
    %17 = vector.load %arg9[%16, %c0_4] : memref<8x128xf32, #tpu.memory_space<vmem>>, vector<1x128xf32>
    tpu.vector_store %arg9[%16, %c0_4], %15 {strides = array<i32>} : memref<8x128xf32, #tpu.memory_space<vmem>>, vector<1x128xf32>,
    %c3_i32 = arith.constant 3 : i32
    %18 = arith.index_cast %c3_i32 : i32 to index
    %19 = memref.load %arg0[%18] : memref<8xi32, #tpu.memory_space<smem>>
    %20 = arith.index_cast %19 : i32 to index
    %c0_5 = arith.constant 0 : index
    %21 = vector.load %arg1[%20, %c0_5] : memref<28x128xf32, #tpu.memory_space<vmem>>, vector<1x128xf32>
    %22 = arith.index_cast %c3_i32 : i32 to index
    %c0_6 = arith.constant 0 : index
    %23 = vector.load %arg9[%22, %c0_6] : memref<8x128xf32, #tpu.memory_space<vmem>>, vector<1x128xf32>
    tpu.vector_store %arg9[%22, %c0_6], %21 {strides = array<i32>} : memref<8x128xf32, #tpu.memory_space<vmem>>, vector<1x128xf32>,
    %c4_i32 = arith.constant 4 : i32
    %24 = arith.index_cast %c4_i32 : i32 to index
    %25 = memref.load %arg0[%24] : memref<8xi32, #tpu.memory_space<smem>>
    %26 = arith.index_cast %25 : i32 to index
    %c0_7 = arith.constant 0 : index
    %27 = vector.load %arg1[%26, %c0_7] : memref<28x128xf32, #tpu.memory_space<vmem>>, vector<1x128xf32>
    %28 = arith.index_cast %c4_i32 : i32 to index
    %c0_8 = arith.constant 0 : index
    %29 = vector.load %arg9[%28, %c0_8] : memref<8x128xf32, #tpu.memory_space<vmem>>, vector<1x128xf32>
    tpu.vector_store %arg9[%28, %c0_8], %27 {strides = array<i32>} : memref<8x128xf32, #tpu.memory_space<vmem>>, vector<1x128xf32>,
    %c5_i32 = arith.constant 5 : i32
    %30 = arith.index_cast %c5_i32 : i32 to index
    %31 = memref.load %arg0[%30] : memref<8xi32, #tpu.memory_space<smem>>
    %32 = arith.index_cast %31 : i32 to index
    %c0_9 = arith.constant 0 : index
    %33 = vector.load %arg1[%32, %c0_9] : memref<28x128xf32, #tpu.memory_space<vmem>>, vector<1x128xf32>
    %34 = arith.index_cast %c5_i32 : i32 to index
    %c0_10 = arith.constant 0 : index
    %35 = vector.load %arg9[%34, %c0_10] : memref<8x128xf32, #tpu.memory_space<vmem>>, vector<1x128xf32>
    tpu.vector_store %arg9[%34, %c0_10], %33 {strides = array<i32>} : memref<8x128xf32, #tpu.memory_space<vmem>>, vector<1x128xf32>,
    %c6_i32 = arith.constant 6 : i32
    %36 = arith.index_cast %c6_i32 : i32 to index
    %37 = memref.load %arg0[%36] : memref<8xi32, #tpu.memory_space<smem>>
    %38 = arith.index_cast %37 : i32 to index
    %c0_11 = arith.constant 0 : index
    %39 = vector.load %arg1[%38, %c0_11] : memref<28x128xf32, #tpu.memory_space<vmem>>, vector<1x128xf32>
    %40 = arith.index_cast %c6_i32 : i32 to index
    %c0_12 = arith.constant 0 : index
    %41 = vector.load %arg9[%40, %c0_12] : memref<8x128xf32, #tpu.memory_space<vmem>>, vector<1x128xf32>
    tpu.vector_store %arg9[%40, %c0_12], %39 {strides = array<i32>} : memref<8x128xf32, #tpu.memory_space<vmem>>, vector<1x128xf32>,
    %c7_i32 = arith.constant 7 : i32
    %42 = arith.index_cast %c7_i32 : i32 to index
    %43 = memref.load %arg0[%42] : memref<8xi32, #tpu.memory_space<smem>>
    %44 = arith.index_cast %43 : i32 to index
    %c0_13 = arith.constant 0 : index
    %45 = vector.load %arg1[%44, %c0_13] : memref<28x128xf32, #tpu.memory_space<vmem>>, vector<1x128xf32>
    %46 = arith.index_cast %c7_i32 : i32 to index
    %c0_14 = arith.constant 0 : index
    %47 = vector.load %arg9[%46, %c0_14] : memref<8x128xf32, #tpu.memory_space<vmem>>, vector<1x128xf32>
    tpu.vector_store %arg9[%46, %c0_14], %45 {strides = array<i32>} : memref<8x128xf32, #tpu.memory_space<vmem>>, vector<1x128xf32>,
    %c8_i32 = arith.constant 8 : i32
    %c0_15 = arith.constant 0 : index
    %c0_16 = arith.constant 0 : index
    %48 = vector.load %arg9[%c0_15, %c0_16] : memref<8x128xf32, #tpu.memory_space<vmem>>, vector<8x128xf32>
    %49 = arith.truncf %48 : vector<8x128xf32> to vector<8x128xbf16>
    %c0_17 = arith.constant 0 : index
    %c0_18 = arith.constant 0 : index
    %50 = vector.load %arg2[%c0_17, %c0_18] : memref<128x512xbf16, #tpu.memory_space<vmem>>, vector<128x512xbf16>
    %cst = arith.constant dense<0.000000e+00> : vector<8x512xf32>
    %51 = tpu.matmul %49, %50, %cst {dimension_numbers = #tpu.dot_dimension_numbers<[1], [0], [0], [1], [0, 0, 1, 1], [], []>} : vector<8x128xbf16>, vector<128x512xbf16>, vector<8x512xf32> -> vector<8x512xf32>
    %c0_19 = arith.constant 0 : index
    %c0_20 = arith.constant 0 : index
    %52 = vector.load %arg4[%c0_19, %c0_20] : memref<1x512xf32, #tpu.memory_space<vmem>>, vector<1x512xf32>
    %53 = vector.broadcast %52 : vector<1x512xf32> to vector<8x512xf32>
    %54 = arith.addf %51, %53 : vector<8x512xf32>
    %c0_21 = arith.constant 0 : index
    %c0_22 = arith.constant 0 : index
    %55 = vector.load %arg10[%c0_21, %c0_22] : memref<8x512xf32, #tpu.memory_space<vmem>>, vector<8x512xf32>
    tpu.vector_store %arg10[%c0_21, %c0_22], %54 {strides = array<i32>} : memref<8x512xf32, #tpu.memory_space<vmem>>, vector<8x512xf32>,
    %c0_23 = arith.constant 0 : index
    %c0_24 = arith.constant 0 : index
    %56 = vector.load %arg5[%c0_23, %c0_24] : memref<1x128xf32, #tpu.memory_space<vmem>>, vector<1x128xf32>
    %c0_25 = arith.constant 0 : index
    %c0_26 = arith.constant 0 : index
    %57 = vector.load %arg11[%c0_25, %c0_26] : memref<1x128xf32, #tpu.memory_space<vmem>>, vector<1x128xf32>
    tpu.vector_store %arg11[%c0_25, %c0_26], %56 {strides = array<i32>} : memref<1x128xf32, #tpu.memory_space<vmem>>, vector<1x128xf32>,
    %c0_27 = arith.constant 0 : index
    %c0_28 = arith.constant 0 : index
    %58 = vector.load %arg6[%c0_27, %c0_28] : memref<1x128xf32, #tpu.memory_space<vmem>>, vector<1x128xf32>
    %c0_29 = arith.constant 0 : index
    %c0_30 = arith.constant 0 : index
    %59 = vector.load %arg12[%c0_29, %c0_30] : memref<1x128xf32, #tpu.memory_space<vmem>>, vector<1x128xf32>
    tpu.vector_store %arg12[%c0_29, %c0_30], %58 {strides = array<i32>} : memref<1x128xf32, #tpu.memory_space<vmem>>, vector<1x128xf32>,
    %c0_i32_31 = arith.constant 0 : i32
    %c0_32 = arith.constant 0 : index
    %c0_33 = arith.constant 0 : index
    %60 = vector.load %arg11[%c0_32, %c0_33] : memref<1x128xf32, #tpu.memory_space<vmem>>, vector<1x128xf32>
    %c0_34 = arith.constant 0 : index
    %c0_35 = arith.constant 0 : index
    %61 = vector.load %arg12[%c0_34, %c0_35] : memref<1x128xf32, #tpu.memory_space<vmem>>, vector<1x128xf32>
    %62 = arith.index_cast %c0_i32_31 : i32 to index
    %c0_36 = arith.constant 0 : index
    %63 = vector.load %arg10[%62, %c0_36] : memref<8x512xf32, #tpu.memory_space<vmem>>, vector<1x512xf32>
    %64 = arith.truncf %60 : vector<1x128xf32> to vector<1x128xbf16>
    %c0_37 = arith.constant 0 : index
    %c0_38 = arith.constant 0 : index
    %65 = vector.load %arg3[%c0_37, %c0_38] : memref<128x512xbf16, #tpu.memory_space<vmem>>, vector<128x512xbf16>
    %cst_39 = arith.constant dense<0.000000e+00> : vector<1x512xf32>
    %66 = tpu.matmul %64, %65, %cst_39 {dimension_numbers = #tpu.dot_dimension_numbers<[1], [0], [0], [1], [0, 0, 1, 1], [], []>} : vector<1x128xbf16>, vector<128x512xbf16>, vector<1x512xf32> -> vector<1x512xf32>
    %67 = arith.addf %63, %66 : vector<1x512xf32>
    %68 = vector.extract_strided_slice %67 {offsets = [0, 0], sizes = [1, 128], strides = [1, 1]} : vector<1x512xf32> to vector<1x128xf32>
    %69 = arith.negf %68 : vector<1x128xf32>
    %70 = math.exp %69 : vector<1x128xf32>
    %cst_40 = arith.constant 1.000000e+00 : f32
    %71 = vector.broadcast %cst_40 : f32 to vector<1x128xf32>
    %72 = arith.addf %71, %70 : vector<1x128xf32>
    %73 = arith.divf %71, %72 : vector<1x128xf32>
    %74 = vector.extract_strided_slice %67 {offsets = [0, 128], sizes = [1, 128], strides = [1, 1]} : vector<1x512xf32> to vector<1x128xf32>
    %75 = arith.negf %74 : vector<1x128xf32>
    %76 = math.exp %75 : vector<1x128xf32>
    %cst_41 = arith.constant 1.000000e+00 : f32
    %77 = vector.broadcast %cst_41 : f32 to vector<1x128xf32>
    %78 = arith.addf %77, %76 : vector<1x128xf32>
    %79 = arith.divf %77, %78 : vector<1x128xf32>
    %80 = vector.extract_strided_slice %67 {offsets = [0, 256], sizes = [1, 128], strides = [1, 1]} : vector<1x512xf32> to vector<1x128xf32>
    %81 = math.tanh %80 : vector<1x128xf32>
    %82 = vector.extract_strided_slice %67 {offsets = [0, 384], sizes = [1, 128], strides = [1, 1]} : vector<1x512xf32> to vector<1x128xf32>
    %83 = arith.negf %82 : vector<1x128xf32>
    %84 = math.exp %83 : vector<1x128xf32>
    %cst_42 = arith.constant 1.000000e+00 : f32
    %85 = vector.broadcast %cst_42 : f32 to vector<1x128xf32>
    %86 = arith.addf %85, %84 : vector<1x128xf32>
    %87 = arith.divf %85, %86 : vector<1x128xf32>
    %88 = arith.mulf %79, %61 : vector<1x128xf32>
    %89 = arith.mulf %73, %81 : vector<1x128xf32>
    %90 = arith.addf %88, %89 : vector<1x128xf32>
    %91 = math.tanh %90 : vector<1x128xf32>
    %92 = arith.mulf %87, %91 : vector<1x128xf32>
    %c0_43 = arith.constant 0 : index
    %c0_44 = arith.constant 0 : index
    %93 = vector.load %arg11[%c0_43, %c0_44] : memref<1x128xf32, #tpu.memory_space<vmem>>, vector<1x128xf32>
    tpu.vector_store %arg11[%c0_43, %c0_44], %92 {strides = array<i32>} : memref<1x128xf32, #tpu.memory_space<vmem>>, vector<1x128xf32>,
    %c0_45 = arith.constant 0 : index
    %c0_46 = arith.constant 0 : index
    %94 = vector.load %arg12[%c0_45, %c0_46] : memref<1x128xf32, #tpu.memory_space<vmem>>, vector<1x128xf32>
    tpu.vector_store %arg12[%c0_45, %c0_46], %90 {strides = array<i32>} : memref<1x128xf32, #tpu.memory_space<vmem>>, vector<1x128xf32>,
    %95 = arith.index_cast %c0_i32_31 : i32 to index
    %c0_47 = arith.constant 0 : index
    %96 = vector.load %arg7[%95, %c0_47] : memref<8x128xf32, #tpu.memory_space<vmem>>, vector<1x128xf32>
    tpu.vector_store %arg7[%95, %c0_47], %92 {strides = array<i32>} : memref<8x128xf32, #tpu.memory_space<vmem>>, vector<1x128xf32>,
    %c1_i32_48 = arith.constant 1 : i32
    %c0_49 = arith.constant 0 : index
    %c0_50 = arith.constant 0 : index
    %97 = vector.load %arg11[%c0_49, %c0_50] : memref<1x128xf32, #tpu.memory_space<vmem>>, vector<1x128xf32>
    %c0_51 = arith.constant 0 : index
    %c0_52 = arith.constant 0 : index
    %98 = vector.load %arg12[%c0_51, %c0_52] : memref<1x128xf32, #tpu.memory_space<vmem>>, vector<1x128xf32>
    %99 = arith.index_cast %c1_i32_48 : i32 to index
    %c0_53 = arith.constant 0 : index
    %100 = vector.load %arg10[%99, %c0_53] : memref<8x512xf32, #tpu.memory_space<vmem>>, vector<1x512xf32>
    %101 = arith.truncf %97 : vector<1x128xf32> to vector<1x128xbf16>
    %c0_54 = arith.constant 0 : index
    %c0_55 = arith.constant 0 : index
    %102 = vector.load %arg3[%c0_54, %c0_55] : memref<128x512xbf16, #tpu.memory_space<vmem>>, vector<128x512xbf16>
    %cst_56 = arith.constant dense<0.000000e+00> : vector<1x512xf32>
    %103 = tpu.matmul %101, %102, %cst_56 {dimension_numbers = #tpu.dot_dimension_numbers<[1], [0], [0], [1], [0, 0, 1, 1], [], []>} : vector<1x128xbf16>, vector<128x512xbf16>, vector<1x512xf32> -> vector<1x512xf32>
    %104 = arith.addf %100, %103 : vector<1x512xf32>
    %105 = vector.extract_strided_slice %104 {offsets = [0, 0], sizes = [1, 128], strides = [1, 1]} : vector<1x512xf32> to vector<1x128xf32>
    %106 = arith.negf %105 : vector<1x128xf32>
    %107 = math.exp %106 : vector<1x128xf32>
    %cst_57 = arith.constant 1.000000e+00 : f32
    %108 = vector.broadcast %cst_57 : f32 to vector<1x128xf32>
    %109 = arith.addf %108, %107 : vector<1x128xf32>
    %110 = arith.divf %108, %109 : vector<1x128xf32>
    %111 = vector.extract_strided_slice %104 {offsets = [0, 128], sizes = [1, 128], strides = [1, 1]} : vector<1x512xf32> to vector<1x128xf32>
    %112 = arith.negf %111 : vector<1x128xf32>
    %113 = math.exp %112 : vector<1x128xf32>
    %cst_58 = arith.constant 1.000000e+00 : f32
    %114 = vector.broadcast %cst_58 : f32 to vector<1x128xf32>
    %115 = arith.addf %114, %113 : vector<1x128xf32>
    %116 = arith.divf %114, %115 : vector<1x128xf32>
    %117 = vector.extract_strided_slice %104 {offsets = [0, 256], sizes = [1, 128], strides = [1, 1]} : vector<1x512xf32> to vector<1x128xf32>
    %118 = math.tanh %117 : vector<1x128xf32>
    %119 = vector.extract_strided_slice %104 {offsets = [0, 384], sizes = [1, 128], strides = [1, 1]} : vector<1x512xf32> to vector<1x128xf32>
    %120 = arith.negf %119 : vector<1x128xf32>
    %121 = math.exp %120 : vector<1x128xf32>
    %cst_59 = arith.constant 1.000000e+00 : f32
    %122 = vector.broadcast %cst_59 : f32 to vector<1x128xf32>
    %123 = arith.addf %122, %121 : vector<1x128xf32>
    %124 = arith.divf %122, %123 : vector<1x128xf32>
    %125 = arith.mulf %116, %98 : vector<1x128xf32>
    %126 = arith.mulf %110, %118 : vector<1x128xf32>
    %127 = arith.addf %125, %126 : vector<1x128xf32>
    %128 = math.tanh %127 : vector<1x128xf32>
    %129 = arith.mulf %124, %128 : vector<1x128xf32>
    %c0_60 = arith.constant 0 : index
    %c0_61 = arith.constant 0 : index
    %130 = vector.load %arg11[%c0_60, %c0_61] : memref<1x128xf32, #tpu.memory_space<vmem>>, vector<1x128xf32>
    tpu.vector_store %arg11[%c0_60, %c0_61], %129 {strides = array<i32>} : memref<1x128xf32, #tpu.memory_space<vmem>>, vector<1x128xf32>,
    %c0_62 = arith.constant 0 : index
    %c0_63 = arith.constant 0 : index
    %131 = vector.load %arg12[%c0_62, %c0_63] : memref<1x128xf32, #tpu.memory_space<vmem>>, vector<1x128xf32>
    tpu.vector_store %arg12[%c0_62, %c0_63], %127 {strides = array<i32>} : memref<1x128xf32, #tpu.memory_space<vmem>>, vector<1x128xf32>,
    %132 = arith.index_cast %c1_i32_48 : i32 to index
    %c0_64 = arith.constant 0 : index
    %133 = vector.load %arg7[%132, %c0_64] : memref<8x128xf32, #tpu.memory_space<vmem>>, vector<1x128xf32>
    tpu.vector_store %arg7[%132, %c0_64], %129 {strides = array<i32>} : memref<8x128xf32, #tpu.memory_space<vmem>>, vector<1x128xf32>,
    %c2_i32_65 = arith.constant 2 : i32
    %c0_66 = arith.constant 0 : index
    %c0_67 = arith.constant 0 : index
    %134 = vector.load %arg11[%c0_66, %c0_67] : memref<1x128xf32, #tpu.memory_space<vmem>>, vector<1x128xf32>
    %c0_68 = arith.constant 0 : index
    %c0_69 = arith.constant 0 : index
    %135 = vector.load %arg12[%c0_68, %c0_69] : memref<1x128xf32, #tpu.memory_space<vmem>>, vector<1x128xf32>
    %136 = arith.index_cast %c2_i32_65 : i32 to index
    %c0_70 = arith.constant 0 : index
    %137 = vector.load %arg10[%136, %c0_70] : memref<8x512xf32, #tpu.memory_space<vmem>>, vector<1x512xf32>
    %138 = arith.truncf %134 : vector<1x128xf32> to vector<1x128xbf16>
    %c0_71 = arith.constant 0 : index
    %c0_72 = arith.constant 0 : index
    %139 = vector.load %arg3[%c0_71, %c0_72] : memref<128x512xbf16, #tpu.memory_space<vmem>>, vector<128x512xbf16>
    %cst_73 = arith.constant dense<0.000000e+00> : vector<1x512xf32>
    %140 = tpu.matmul %138, %139, %cst_73 {dimension_numbers = #tpu.dot_dimension_numbers<[1], [0], [0], [1], [0, 0, 1, 1], [], []>} : vector<1x128xbf16>, vector<128x512xbf16>, vector<1x512xf32> -> vector<1x512xf32>
    %141 = arith.addf %137, %140 : vector<1x512xf32>
    %142 = vector.extract_strided_slice %141 {offsets = [0, 0], sizes = [1, 128], strides = [1, 1]} : vector<1x512xf32> to vector<1x128xf32>
    %143 = arith.negf %142 : vector<1x128xf32>
    %144 = math.exp %143 : vector<1x128xf32>
    %cst_74 = arith.constant 1.000000e+00 : f32
    %145 = vector.broadcast %cst_74 : f32 to vector<1x128xf32>
    %146 = arith.addf %145, %144 : vector<1x128xf32>
    %147 = arith.divf %145, %146 : vector<1x128xf32>
    %148 = vector.extract_strided_slice %141 {offsets = [0, 128], sizes = [1, 128], strides = [1, 1]} : vector<1x512xf32> to vector<1x128xf32>
    %149 = arith.negf %148 : vector<1x128xf32>
    %150 = math.exp %149 : vector<1x128xf32>
    %cst_75 = arith.constant 1.000000e+00 : f32
    %151 = vector.broadcast %cst_75 : f32 to vector<1x128xf32>
    %152 = arith.addf %151, %150 : vector<1x128xf32>
    %153 = arith.divf %151, %152 : vector<1x128xf32>
    %154 = vector.extract_strided_slice %141 {offsets = [0, 256], sizes = [1, 128], strides = [1, 1]} : vector<1x512xf32> to vector<1x128xf32>
    %155 = math.tanh %154 : vector<1x128xf32>
    %156 = vector.extract_strided_slice %141 {offsets = [0, 384], sizes = [1, 128], strides = [1, 1]} : vector<1x512xf32> to vector<1x128xf32>
    %157 = arith.negf %156 : vector<1x128xf32>
    %158 = math.exp %157 : vector<1x128xf32>
    %cst_76 = arith.constant 1.000000e+00 : f32
    %159 = vector.broadcast %cst_76 : f32 to vector<1x128xf32>
    %160 = arith.addf %159, %158 : vector<1x128xf32>
    %161 = arith.divf %159, %160 : vector<1x128xf32>
    %162 = arith.mulf %153, %135 : vector<1x128xf32>
    %163 = arith.mulf %147, %155 : vector<1x128xf32>
    %164 = arith.addf %162, %163 : vector<1x128xf32>
    %165 = math.tanh %164 : vector<1x128xf32>
    %166 = arith.mulf %161, %165 : vector<1x128xf32>
    %c0_77 = arith.constant 0 : index
    %c0_78 = arith.constant 0 : index
    %167 = vector.load %arg11[%c0_77, %c0_78] : memref<1x128xf32, #tpu.memory_space<vmem>>, vector<1x128xf32>
    tpu.vector_store %arg11[%c0_77, %c0_78], %166 {strides = array<i32>} : memref<1x128xf32, #tpu.memory_space<vmem>>, vector<1x128xf32>,
    %c0_79 = arith.constant 0 : index
    %c0_80 = arith.constant 0 : index
    %168 = vector.load %arg12[%c0_79, %c0_80] : memref<1x128xf32, #tpu.memory_space<vmem>>, vector<1x128xf32>
    tpu.vector_store %arg12[%c0_79, %c0_80], %164 {strides = array<i32>} : memref<1x128xf32, #tpu.memory_space<vmem>>, vector<1x128xf32>,
    %169 = arith.index_cast %c2_i32_65 : i32 to index
    %c0_81 = arith.constant 0 : index
    %170 = vector.load %arg7[%169, %c0_81] : memref<8x128xf32, #tpu.memory_space<vmem>>, vector<1x128xf32>
    tpu.vector_store %arg7[%169, %c0_81], %166 {strides = array<i32>} : memref<8x128xf32, #tpu.memory_space<vmem>>, vector<1x128xf32>,
    %c3_i32_82 = arith.constant 3 : i32
    %c0_83 = arith.constant 0 : index
    %c0_84 = arith.constant 0 : index
    %171 = vector.load %arg11[%c0_83, %c0_84] : memref<1x128xf32, #tpu.memory_space<vmem>>, vector<1x128xf32>
    %c0_85 = arith.constant 0 : index
    %c0_86 = arith.constant 0 : index
    %172 = vector.load %arg12[%c0_85, %c0_86] : memref<1x128xf32, #tpu.memory_space<vmem>>, vector<1x128xf32>
    %173 = arith.index_cast %c3_i32_82 : i32 to index
    %c0_87 = arith.constant 0 : index
    %174 = vector.load %arg10[%173, %c0_87] : memref<8x512xf32, #tpu.memory_space<vmem>>, vector<1x512xf32>
    %175 = arith.truncf %171 : vector<1x128xf32> to vector<1x128xbf16>
    %c0_88 = arith.constant 0 : index
    %c0_89 = arith.constant 0 : index
    %176 = vector.load %arg3[%c0_88, %c0_89] : memref<128x512xbf16, #tpu.memory_space<vmem>>, vector<128x512xbf16>
    %cst_90 = arith.constant dense<0.000000e+00> : vector<1x512xf32>
    %177 = tpu.matmul %175, %176, %cst_90 {dimension_numbers = #tpu.dot_dimension_numbers<[1], [0], [0], [1], [0, 0, 1, 1], [], []>} : vector<1x128xbf16>, vector<128x512xbf16>, vector<1x512xf32> -> vector<1x512xf32>
    %178 = arith.addf %174, %177 : vector<1x512xf32>
    %179 = vector.extract_strided_slice %178 {offsets = [0, 0], sizes = [1, 128], strides = [1, 1]} : vector<1x512xf32> to vector<1x128xf32>
    %180 = arith.negf %179 : vector<1x128xf32>
    %181 = math.exp %180 : vector<1x128xf32>
    %cst_91 = arith.constant 1.000000e+00 : f32
    %182 = vector.broadcast %cst_91 : f32 to vector<1x128xf32>
    %183 = arith.addf %182, %181 : vector<1x128xf32>
    %184 = arith.divf %182, %183 : vector<1x128xf32>
    %185 = vector.extract_strided_slice %178 {offsets = [0, 128], sizes = [1, 128], strides = [1, 1]} : vector<1x512xf32> to vector<1x128xf32>
    %186 = arith.negf %185 : vector<1x128xf32>
    %187 = math.exp %186 : vector<1x128xf32>
    %cst_92 = arith.constant 1.000000e+00 : f32
    %188 = vector.broadcast %cst_92 : f32 to vector<1x128xf32>
    %189 = arith.addf %188, %187 : vector<1x128xf32>
    %190 = arith.divf %188, %189 : vector<1x128xf32>
    %191 = vector.extract_strided_slice %178 {offsets = [0, 256], sizes = [1, 128], strides = [1, 1]} : vector<1x512xf32> to vector<1x128xf32>
    %192 = math.tanh %191 : vector<1x128xf32>
    %193 = vector.extract_strided_slice %178 {offsets = [0, 384], sizes = [1, 128], strides = [1, 1]} : vector<1x512xf32> to vector<1x128xf32>
    %194 = arith.negf %193 : vector<1x128xf32>
    %195 = math.exp %194 : vector<1x128xf32>
    %cst_93 = arith.constant 1.000000e+00 : f32
    %196 = vector.broadcast %cst_93 : f32 to vector<1x128xf32>
    %197 = arith.addf %196, %195 : vector<1x128xf32>
    %198 = arith.divf %196, %197 : vector<1x128xf32>
    %199 = arith.mulf %190, %172 : vector<1x128xf32>
    %200 = arith.mulf %184, %192 : vector<1x128xf32>
    %201 = arith.addf %199, %200 : vector<1x128xf32>
    %202 = math.tanh %201 : vector<1x128xf32>
    %203 = arith.mulf %198, %202 : vector<1x128xf32>
    %c0_94 = arith.constant 0 : index
    %c0_95 = arith.constant 0 : index
    %204 = vector.load %arg11[%c0_94, %c0_95] : memref<1x128xf32, #tpu.memory_space<vmem>>, vector<1x128xf32>
    tpu.vector_store %arg11[%c0_94, %c0_95], %203 {strides = array<i32>} : memref<1x128xf32, #tpu.memory_space<vmem>>, vector<1x128xf32>,
    %c0_96 = arith.constant 0 : index
    %c0_97 = arith.constant 0 : index
    %205 = vector.load %arg12[%c0_96, %c0_97] : memref<1x128xf32, #tpu.memory_space<vmem>>, vector<1x128xf32>
    tpu.vector_store %arg12[%c0_96, %c0_97], %201 {strides = array<i32>} : memref<1x128xf32, #tpu.memory_space<vmem>>, vector<1x128xf32>,
    %206 = arith.index_cast %c3_i32_82 : i32 to index
    %c0_98 = arith.constant 0 : index
    %207 = vector.load %arg7[%206, %c0_98] : memref<8x128xf32, #tpu.memory_space<vmem>>, vector<1x128xf32>
    tpu.vector_store %arg7[%206, %c0_98], %203 {strides = array<i32>} : memref<8x128xf32, #tpu.memory_space<vmem>>, vector<1x128xf32>,
    %c4_i32_99 = arith.constant 4 : i32
    %c0_100 = arith.constant 0 : index
    %c0_101 = arith.constant 0 : index
    %208 = vector.load %arg11[%c0_100, %c0_101] : memref<1x128xf32, #tpu.memory_space<vmem>>, vector<1x128xf32>
    %c0_102 = arith.constant 0 : index
    %c0_103 = arith.constant 0 : index
    %209 = vector.load %arg12[%c0_102, %c0_103] : memref<1x128xf32, #tpu.memory_space<vmem>>, vector<1x128xf32>
    %210 = arith.index_cast %c4_i32_99 : i32 to index
    %c0_104 = arith.constant 0 : index
    %211 = vector.load %arg10[%210, %c0_104] : memref<8x512xf32, #tpu.memory_space<vmem>>, vector<1x512xf32>
    %212 = arith.truncf %208 : vector<1x128xf32> to vector<1x128xbf16>
    %c0_105 = arith.constant 0 : index
    %c0_106 = arith.constant 0 : index
    %213 = vector.load %arg3[%c0_105, %c0_106] : memref<128x512xbf16, #tpu.memory_space<vmem>>, vector<128x512xbf16>
    %cst_107 = arith.constant dense<0.000000e+00> : vector<1x512xf32>
    %214 = tpu.matmul %212, %213, %cst_107 {dimension_numbers = #tpu.dot_dimension_numbers<[1], [0], [0], [1], [0, 0, 1, 1], [], []>} : vector<1x128xbf16>, vector<128x512xbf16>, vector<1x512xf32> -> vector<1x512xf32>
    %215 = arith.addf %211, %214 : vector<1x512xf32>
    %216 = vector.extract_strided_slice %215 {offsets = [0, 0], sizes = [1, 128], strides = [1, 1]} : vector<1x512xf32> to vector<1x128xf32>
    %217 = arith.negf %216 : vector<1x128xf32>
    %218 = math.exp %217 : vector<1x128xf32>
    %cst_108 = arith.constant 1.000000e+00 : f32
    %219 = vector.broadcast %cst_108 : f32 to vector<1x128xf32>
    %220 = arith.addf %219, %218 : vector<1x128xf32>
    %221 = arith.divf %219, %220 : vector<1x128xf32>
    %222 = vector.extract_strided_slice %215 {offsets = [0, 128], sizes = [1, 128], strides = [1, 1]} : vector<1x512xf32> to vector<1x128xf32>
    %223 = arith.negf %222 : vector<1x128xf32>
    %224 = math.exp %223 : vector<1x128xf32>
    %cst_109 = arith.constant 1.000000e+00 : f32
    %225 = vector.broadcast %cst_109 : f32 to vector<1x128xf32>
    %226 = arith.addf %225, %224 : vector<1x128xf32>
    %227 = arith.divf %225, %226 : vector<1x128xf32>
    %228 = vector.extract_strided_slice %215 {offsets = [0, 256], sizes = [1, 128], strides = [1, 1]} : vector<1x512xf32> to vector<1x128xf32>
    %229 = math.tanh %228 : vector<1x128xf32>
    %230 = vector.extract_strided_slice %215 {offsets = [0, 384], sizes = [1, 128], strides = [1, 1]} : vector<1x512xf32> to vector<1x128xf32>
    %231 = arith.negf %230 : vector<1x128xf32>
    %232 = math.exp %231 : vector<1x128xf32>
    %cst_110 = arith.constant 1.000000e+00 : f32
    %233 = vector.broadcast %cst_110 : f32 to vector<1x128xf32>
    %234 = arith.addf %233, %232 : vector<1x128xf32>
    %235 = arith.divf %233, %234 : vector<1x128xf32>
    %236 = arith.mulf %227, %209 : vector<1x128xf32>
    %237 = arith.mulf %221, %229 : vector<1x128xf32>
    %238 = arith.addf %236, %237 : vector<1x128xf32>
    %239 = math.tanh %238 : vector<1x128xf32>
    %240 = arith.mulf %235, %239 : vector<1x128xf32>
    %c0_111 = arith.constant 0 : index
    %c0_112 = arith.constant 0 : index
    %241 = vector.load %arg11[%c0_111, %c0_112] : memref<1x128xf32, #tpu.memory_space<vmem>>, vector<1x128xf32>
    tpu.vector_store %arg11[%c0_111, %c0_112], %240 {strides = array<i32>} : memref<1x128xf32, #tpu.memory_space<vmem>>, vector<1x128xf32>,
    %c0_113 = arith.constant 0 : index
    %c0_114 = arith.constant 0 : index
    %242 = vector.load %arg12[%c0_113, %c0_114] : memref<1x128xf32, #tpu.memory_space<vmem>>, vector<1x128xf32>
    tpu.vector_store %arg12[%c0_113, %c0_114], %238 {strides = array<i32>} : memref<1x128xf32, #tpu.memory_space<vmem>>, vector<1x128xf32>,
    %243 = arith.index_cast %c4_i32_99 : i32 to index
    %c0_115 = arith.constant 0 : index
    %244 = vector.load %arg7[%243, %c0_115] : memref<8x128xf32, #tpu.memory_space<vmem>>, vector<1x128xf32>
    tpu.vector_store %arg7[%243, %c0_115], %240 {strides = array<i32>} : memref<8x128xf32, #tpu.memory_space<vmem>>, vector<1x128xf32>,
    %c5_i32_116 = arith.constant 5 : i32
    %c0_117 = arith.constant 0 : index
    %c0_118 = arith.constant 0 : index
    %245 = vector.load %arg11[%c0_117, %c0_118] : memref<1x128xf32, #tpu.memory_space<vmem>>, vector<1x128xf32>
    %c0_119 = arith.constant 0 : index
    %c0_120 = arith.constant 0 : index
    %246 = vector.load %arg12[%c0_119, %c0_120] : memref<1x128xf32, #tpu.memory_space<vmem>>, vector<1x128xf32>
    %247 = arith.index_cast %c5_i32_116 : i32 to index
    %c0_121 = arith.constant 0 : index
    %248 = vector.load %arg10[%247, %c0_121] : memref<8x512xf32, #tpu.memory_space<vmem>>, vector<1x512xf32>
    %249 = arith.truncf %245 : vector<1x128xf32> to vector<1x128xbf16>
    %c0_122 = arith.constant 0 : index
    %c0_123 = arith.constant 0 : index
    %250 = vector.load %arg3[%c0_122, %c0_123] : memref<128x512xbf16, #tpu.memory_space<vmem>>, vector<128x512xbf16>
    %cst_124 = arith.constant dense<0.000000e+00> : vector<1x512xf32>
    %251 = tpu.matmul %249, %250, %cst_124 {dimension_numbers = #tpu.dot_dimension_numbers<[1], [0], [0], [1], [0, 0, 1, 1], [], []>} : vector<1x128xbf16>, vector<128x512xbf16>, vector<1x512xf32> -> vector<1x512xf32>
    %252 = arith.addf %248, %251 : vector<1x512xf32>
    %253 = vector.extract_strided_slice %252 {offsets = [0, 0], sizes = [1, 128], strides = [1, 1]} : vector<1x512xf32> to vector<1x128xf32>
    %254 = arith.negf %253 : vector<1x128xf32>
    %255 = math.exp %254 : vector<1x128xf32>
    %cst_125 = arith.constant 1.000000e+00 : f32
    %256 = vector.broadcast %cst_125 : f32 to vector<1x128xf32>
    %257 = arith.addf %256, %255 : vector<1x128xf32>
    %258 = arith.divf %256, %257 : vector<1x128xf32>
    %259 = vector.extract_strided_slice %252 {offsets = [0, 128], sizes = [1, 128], strides = [1, 1]} : vector<1x512xf32> to vector<1x128xf32>
    %260 = arith.negf %259 : vector<1x128xf32>
    %261 = math.exp %260 : vector<1x128xf32>
    %cst_126 = arith.constant 1.000000e+00 : f32
    %262 = vector.broadcast %cst_126 : f32 to vector<1x128xf32>
    %263 = arith.addf %262, %261 : vector<1x128xf32>
    %264 = arith.divf %262, %263 : vector<1x128xf32>
    %265 = vector.extract_strided_slice %252 {offsets = [0, 256], sizes = [1, 128], strides = [1, 1]} : vector<1x512xf32> to vector<1x128xf32>
    %266 = math.tanh %265 : vector<1x128xf32>
    %267 = vector.extract_strided_slice %252 {offsets = [0, 384], sizes = [1, 128], strides = [1, 1]} : vector<1x512xf32> to vector<1x128xf32>
    %268 = arith.negf %267 : vector<1x128xf32>
    %269 = math.exp %268 : vector<1x128xf32>
    %cst_127 = arith.constant 1.000000e+00 : f32
    %270 = vector.broadcast %cst_127 : f32 to vector<1x128xf32>
    %271 = arith.addf %270, %269 : vector<1x128xf32>
    %272 = arith.divf %270, %271 : vector<1x128xf32>
    %273 = arith.mulf %264, %246 : vector<1x128xf32>
    %274 = arith.mulf %258, %266 : vector<1x128xf32>
    %275 = arith.addf %273, %274 : vector<1x128xf32>
    %276 = math.tanh %275 : vector<1x128xf32>
    %277 = arith.mulf %272, %276 : vector<1x128xf32>
    %c0_128 = arith.constant 0 : index
    %c0_129 = arith.constant 0 : index
    %278 = vector.load %arg11[%c0_128, %c0_129] : memref<1x128xf32, #tpu.memory_space<vmem>>, vector<1x128xf32>
    tpu.vector_store %arg11[%c0_128, %c0_129], %277 {strides = array<i32>} : memref<1x128xf32, #tpu.memory_space<vmem>>, vector<1x128xf32>,
    %c0_130 = arith.constant 0 : index
    %c0_131 = arith.constant 0 : index
    %279 = vector.load %arg12[%c0_130, %c0_131] : memref<1x128xf32, #tpu.memory_space<vmem>>, vector<1x128xf32>
    tpu.vector_store %arg12[%c0_130, %c0_131], %275 {strides = array<i32>} : memref<1x128xf32, #tpu.memory_space<vmem>>, vector<1x128xf32>,
    %280 = arith.index_cast %c5_i32_116 : i32 to index
    %c0_132 = arith.constant 0 : index
    %281 = vector.load %arg7[%280, %c0_132] : memref<8x128xf32, #tpu.memory_space<vmem>>, vector<1x128xf32>
    tpu.vector_store %arg7[%280, %c0_132], %277 {strides = array<i32>} : memref<8x128xf32, #tpu.memory_space<vmem>>, vector<1x128xf32>,
    %c6_i32_133 = arith.constant 6 : i32
    %c0_134 = arith.constant 0 : index
    %c0_135 = arith.constant 0 : index
    %282 = vector.load %arg11[%c0_134, %c0_135] : memref<1x128xf32, #tpu.memory_space<vmem>>, vector<1x128xf32>
    %c0_136 = arith.constant 0 : index
    %c0_137 = arith.constant 0 : index
    %283 = vector.load %arg12[%c0_136, %c0_137] : memref<1x128xf32, #tpu.memory_space<vmem>>, vector<1x128xf32>
    %284 = arith.index_cast %c6_i32_133 : i32 to index
    %c0_138 = arith.constant 0 : index
    %285 = vector.load %arg10[%284, %c0_138] : memref<8x512xf32, #tpu.memory_space<vmem>>, vector<1x512xf32>
    %286 = arith.truncf %282 : vector<1x128xf32> to vector<1x128xbf16>
    %c0_139 = arith.constant 0 : index
    %c0_140 = arith.constant 0 : index
    %287 = vector.load %arg3[%c0_139, %c0_140] : memref<128x512xbf16, #tpu.memory_space<vmem>>, vector<128x512xbf16>
    %cst_141 = arith.constant dense<0.000000e+00> : vector<1x512xf32>
    %288 = tpu.matmul %286, %287, %cst_141 {dimension_numbers = #tpu.dot_dimension_numbers<[1], [0], [0], [1], [0, 0, 1, 1], [], []>} : vector<1x128xbf16>, vector<128x512xbf16>, vector<1x512xf32> -> vector<1x512xf32>
    %289 = arith.addf %285, %288 : vector<1x512xf32>
    %290 = vector.extract_strided_slice %289 {offsets = [0, 0], sizes = [1, 128], strides = [1, 1]} : vector<1x512xf32> to vector<1x128xf32>
    %291 = arith.negf %290 : vector<1x128xf32>
    %292 = math.exp %291 : vector<1x128xf32>
    %cst_142 = arith.constant 1.000000e+00 : f32
    %293 = vector.broadcast %cst_142 : f32 to vector<1x128xf32>
    %294 = arith.addf %293, %292 : vector<1x128xf32>
    %295 = arith.divf %293, %294 : vector<1x128xf32>
    %296 = vector.extract_strided_slice %289 {offsets = [0, 128], sizes = [1, 128], strides = [1, 1]} : vector<1x512xf32> to vector<1x128xf32>
    %297 = arith.negf %296 : vector<1x128xf32>
    %298 = math.exp %297 : vector<1x128xf32>
    %cst_143 = arith.constant 1.000000e+00 : f32
    %299 = vector.broadcast %cst_143 : f32 to vector<1x128xf32>
    %300 = arith.addf %299, %298 : vector<1x128xf32>
    %301 = arith.divf %299, %300 : vector<1x128xf32>
    %302 = vector.extract_strided_slice %289 {offsets = [0, 256], sizes = [1, 128], strides = [1, 1]} : vector<1x512xf32> to vector<1x128xf32>
    %303 = math.tanh %302 : vector<1x128xf32>
    %304 = vector.extract_strided_slice %289 {offsets = [0, 384], sizes = [1, 128], strides = [1, 1]} : vector<1x512xf32> to vector<1x128xf32>
    %305 = arith.negf %304 : vector<1x128xf32>
    %306 = math.exp %305 : vector<1x128xf32>
    %cst_144 = arith.constant 1.000000e+00 : f32
    %307 = vector.broadcast %cst_144 : f32 to vector<1x128xf32>
    %308 = arith.addf %307, %306 : vector<1x128xf32>
    %309 = arith.divf %307, %308 : vector<1x128xf32>
    %310 = arith.mulf %301, %283 : vector<1x128xf32>
    %311 = arith.mulf %295, %303 : vector<1x128xf32>
    %312 = arith.addf %310, %311 : vector<1x128xf32>
    %313 = math.tanh %312 : vector<1x128xf32>
    %314 = arith.mulf %309, %313 : vector<1x128xf32>
    %c0_145 = arith.constant 0 : index
    %c0_146 = arith.constant 0 : index
    %315 = vector.load %arg11[%c0_145, %c0_146] : memref<1x128xf32, #tpu.memory_space<vmem>>, vector<1x128xf32>
    tpu.vector_store %arg11[%c0_145, %c0_146], %314 {strides = array<i32>} : memref<1x128xf32, #tpu.memory_space<vmem>>, vector<1x128xf32>,
    %c0_147 = arith.constant 0 : index
    %c0_148 = arith.constant 0 : index
    %316 = vector.load %arg12[%c0_147, %c0_148] : memref<1x128xf32, #tpu.memory_space<vmem>>, vector<1x128xf32>
    tpu.vector_store %arg12[%c0_147, %c0_148], %312 {strides = array<i32>} : memref<1x128xf32, #tpu.memory_space<vmem>>, vector<1x128xf32>,
    %317 = arith.index_cast %c6_i32_133 : i32 to index
    %c0_149 = arith.constant 0 : index
    %318 = vector.load %arg7[%317, %c0_149] : memref<8x128xf32, #tpu.memory_space<vmem>>, vector<1x128xf32>
    tpu.vector_store %arg7[%317, %c0_149], %314 {strides = array<i32>} : memref<8x128xf32, #tpu.memory_space<vmem>>, vector<1x128xf32>,
    %c7_i32_150 = arith.constant 7 : i32
    %c0_151 = arith.constant 0 : index
    %c0_152 = arith.constant 0 : index
    %319 = vector.load %arg11[%c0_151, %c0_152] : memref<1x128xf32, #tpu.memory_space<vmem>>, vector<1x128xf32>
    %c0_153 = arith.constant 0 : index
    %c0_154 = arith.constant 0 : index
    %320 = vector.load %arg12[%c0_153, %c0_154] : memref<1x128xf32, #tpu.memory_space<vmem>>, vector<1x128xf32>
    %321 = arith.index_cast %c7_i32_150 : i32 to index
    %c0_155 = arith.constant 0 : index
    %322 = vector.load %arg10[%321, %c0_155] : memref<8x512xf32, #tpu.memory_space<vmem>>, vector<1x512xf32>
    %323 = arith.truncf %319 : vector<1x128xf32> to vector<1x128xbf16>
    %c0_156 = arith.constant 0 : index
    %c0_157 = arith.constant 0 : index
    %324 = vector.load %arg3[%c0_156, %c0_157] : memref<128x512xbf16, #tpu.memory_space<vmem>>, vector<128x512xbf16>
    %cst_158 = arith.constant dense<0.000000e+00> : vector<1x512xf32>
    %325 = tpu.matmul %323, %324, %cst_158 {dimension_numbers = #tpu.dot_dimension_numbers<[1], [0], [0], [1], [0, 0, 1, 1], [], []>} : vector<1x128xbf16>, vector<128x512xbf16>, vector<1x512xf32> -> vector<1x512xf32>
    %326 = arith.addf %322, %325 : vector<1x512xf32>
    %327 = vector.extract_strided_slice %326 {offsets = [0, 0], sizes = [1, 128], strides = [1, 1]} : vector<1x512xf32> to vector<1x128xf32>
    %328 = arith.negf %327 : vector<1x128xf32>
    %329 = math.exp %328 : vector<1x128xf32>
    %cst_159 = arith.constant 1.000000e+00 : f32
    %330 = vector.broadcast %cst_159 : f32 to vector<1x128xf32>
    %331 = arith.addf %330, %329 : vector<1x128xf32>
    %332 = arith.divf %330, %331 : vector<1x128xf32>
    %333 = vector.extract_strided_slice %326 {offsets = [0, 128], sizes = [1, 128], strides = [1, 1]} : vector<1x512xf32> to vector<1x128xf32>
    %334 = arith.negf %333 : vector<1x128xf32>
    %335 = math.exp %334 : vector<1x128xf32>
    %cst_160 = arith.constant 1.000000e+00 : f32
    %336 = vector.broadcast %cst_160 : f32 to vector<1x128xf32>
    %337 = arith.addf %336, %335 : vector<1x128xf32>
    %338 = arith.divf %336, %337 : vector<1x128xf32>
    %339 = vector.extract_strided_slice %326 {offsets = [0, 256], sizes = [1, 128], strides = [1, 1]} : vector<1x512xf32> to vector<1x128xf32>
    %340 = math.tanh %339 : vector<1x128xf32>
    %341 = vector.extract_strided_slice %326 {offsets = [0, 384], sizes = [1, 128], strides = [1, 1]} : vector<1x512xf32> to vector<1x128xf32>
    %342 = arith.negf %341 : vector<1x128xf32>
    %343 = math.exp %342 : vector<1x128xf32>
    %cst_161 = arith.constant 1.000000e+00 : f32
    %344 = vector.broadcast %cst_161 : f32 to vector<1x128xf32>
    %345 = arith.addf %344, %343 : vector<1x128xf32>
    %346 = arith.divf %344, %345 : vector<1x128xf32>
    %347 = arith.mulf %338, %320 : vector<1x128xf32>
    %348 = arith.mulf %332, %340 : vector<1x128xf32>
    %349 = arith.addf %347, %348 : vector<1x128xf32>
    %350 = math.tanh %349 : vector<1x128xf32>
    %351 = arith.mulf %346, %350 : vector<1x128xf32>
    %c0_162 = arith.constant 0 : index
    %c0_163 = arith.constant 0 : index
    %352 = vector.load %arg11[%c0_162, %c0_163] : memref<1x128xf32, #tpu.memory_space<vmem>>, vector<1x128xf32>
    tpu.vector_store %arg11[%c0_162, %c0_163], %351 {strides = array<i32>} : memref<1x128xf32, #tpu.memory_space<vmem>>, vector<1x128xf32>,
    %c0_164 = arith.constant 0 : index
    %c0_165 = arith.constant 0 : index
    %353 = vector.load %arg12[%c0_164, %c0_165] : memref<1x128xf32, #tpu.memory_space<vmem>>, vector<1x128xf32>
    tpu.vector_store %arg12[%c0_164, %c0_165], %349 {strides = array<i32>} : memref<1x128xf32, #tpu.memory_space<vmem>>, vector<1x128xf32>,
    %354 = arith.index_cast %c7_i32_150 : i32 to index
    %c0_166 = arith.constant 0 : index
    %355 = vector.load %arg7[%354, %c0_166] : memref<8x128xf32, #tpu.memory_space<vmem>>, vector<1x128xf32>
    tpu.vector_store %arg7[%354, %c0_166], %351 {strides = array<i32>} : memref<8x128xf32, #tpu.memory_space<vmem>>, vector<1x128xf32>,
    %c8_i32_167 = arith.constant 8 : i32
    %c0_168 = arith.constant 0 : index
    %c0_169 = arith.constant 0 : index
    %356 = vector.load %arg12[%c0_168, %c0_169] : memref<1x128xf32, #tpu.memory_space<vmem>>, vector<1x128xf32>
    %c0_170 = arith.constant 0 : index
    %c0_171 = arith.constant 0 : index
    %357 = vector.load %arg8[%c0_170, %c0_171] : memref<1x128xf32, #tpu.memory_space<vmem>>, vector<1x128xf32>
    tpu.vector_store %arg8[%c0_170, %c0_171], %356 {strides = array<i32>} : memref<1x128xf32, #tpu.memory_space<vmem>>, vector<1x128xf32>,
    return
  }
}

</mosaic_0001>

<bundles_post_ra>
// kernel: encoder_rnn_encode_sequence.1
= control target key start
LH: loop header
LB: loop body
LE: loop exit
PB: predicated region body
PF: predicated region fallthrough
CT: control target
= control target key end

     0   :  { %14 = vsyncpa [#allocation9], 0  ;;  %s4504_s0 = inlined_call_operand.vmem [shape: s32[8], index: 0, kind: input, shape index: {}]   ;;  %s4505_s1 = inlined_call_operand.hbm [shape: f32[28,128], index: 1, kind: input, shape index: {}]   ;;  %s4506_s2 = inlined_call_operand.hbm [shape: bf16[128,512], index: 2, kind: input, shape index: {}]   ;;  %s4507_s3 = inlined_call_operand.hbm [shape: bf16[128,512], index: 3, kind: input, shape index: {}]   ;;  %s4508_s4 = inlined_call_operand.vmem [shape: f32[1,512], index: 4, kind: input, shape index: {}]   ;;  %s4509_s5 = inlined_call_operand.vmem [shape: f32[1,128], index: 5, kind: input, shape index: {}]   ;;  %s4510_s6 = inlined_call_operand.vmem [shape: f32[1,128], index: 6, kind: input, shape index: {}]   ;;  %s4511_s7 = inlined_call_operand.vmem [shape: f32[8,128], index: 7, kind: output, shape index: {0}]   ;;  %s4512_s8 = inlined_call_operand.hbm [shape: f32[1,128], index: 8, kind: output, shape index: {1}]  }
   0x1   :  { %15 = vsyncpa [#allocation7], 0 }
   0x2   :  { %16 = vsyncpa [#allocation12], 0 }
   0x3   :  { %17 = vsyncpa [#allocation8], 0  ;;  %s3906_s27 = smov [#allocation11]   ;;  %s24_s9 = sshll.u32 %s4504_s0, 4  ;;  %s25_s9 = int_to_ptr.vmem [resolvable:$true] %s24_s9 }
   0x4   :  { %s45_s28 = sshll.u32 %s3906_s27, 4  ;;  %s3798_s12 = scalar_lea.hbm %s4506_s2, 4096  ;;  %s46_s28 = int_to_ptr.vmem [resolvable:$true] %s45_s28 }
   0x5   :  { %p3799_p0 = scmp.ne.s32.totalorder %s4506_s2, %s3798_s12  ;;  %p3802_p1 = scmp.lt.u32.totalorder %s3798_s12, %s4506_s2 }
   0x7   :  { %p3804_p2 = pnand %p3802_p1, %p3799_p0 }
   0x9   :  { %3807 = shalt.err (!%p3804_p2)
}
   0xa   :  { %s3808_s17 = scalar_lea.vmem %s46_s28, 4096  ;;  %p3813_p4 = scmp.lt.s32.totalorder %s46_s28, %s46_s28 }
   0xb   :  { %p3809_p3 = scmp.ne.s32.totalorder %s46_s28, %s3808_s17  ;;  %p3814_p5 = scmp.lt.s32.totalorder %s3808_s17, %s3808_s17 }
   0xd   :  { %p3815_p6 = por %p3814_p5, %p3813_p4 }
   0xf   :  { %p3816_p7 = pnand %p3815_p6, %p3809_p3 }
  0x11   :  { %3819 = shalt.err (!%p3816_p7)
}
  0x12   :  { %s3907_s0 = smov 256   ;;  %s3908_s18 = smov 16  }
  0x13   :  { %51 = dma.hbm_to_vmem [thread:$0]  %s4506_s2, 4096, %s46_s28, [#allocation12], %s3907_s0, %s3907_s0, %s3908_s18  }
  0x14   :  { %s3820_s21 = scalar_lea.vmem %s25_s9, 16  ;;  %p3825_p9 = scmp.lt.s32.totalorder %s25_s9, %s25_s9 }
  0x15   :  { %p3821_p8 = scmp.ne.s32.totalorder %s25_s9, %s3820_s21  ;;  %p3826_p10 = scmp.lt.s32.totalorder %s3820_s21, %s3820_s21 }
  0x17   :  { %p3827_p11 = por %p3826_p10, %p3825_p9 }
  0x19   :  { %p3828_p12 = pnand %p3827_p11, %p3821_p8 }
  0x1b   :  { %3831 = shalt.err (!%p3828_p12)
}
  0x1c   :  { %s3909_s22 = smov [#allocation6]   ;;  %s3910_s23 = smov [#allocation10]  }
  0x1d   :  { %27 = dma.vmem_to_smem %s25_s9, 16, %s3909_s22, [#allocation9]  }
  0x1e   :  { %s33_s24 = sshll.u32 %s3910_s23, 4  ;;  %s3832_s27 = scalar_lea.hbm %s4505_s1, 512  ;;  %s34_s24 = int_to_ptr.vmem [resolvable:$true] %s33_s24 }
  0x1f   :  { %p3833_p13 = scmp.ne.s32.totalorder %s4505_s1, %s3832_s27  ;;  %p3836_p0 = scmp.lt.u32.totalorder %s3832_s27, %s4505_s1 }
  0x21   :  { %p3838_p1 = pnand %p3836_p0, %p3833_p13 }
  0x23   :  { %3841 = shalt.err (!%p3838_p1)
}
  0x24   :  { %s3842_s10 = scalar_lea.vmem %s34_s24, 512  ;;  %p3847_p3 = scmp.lt.s32.totalorder %s34_s24, %s34_s24 }
  0x25   :  { %p3843_p2 = scmp.ne.s32.totalorder %s34_s24, %s3842_s10  ;;  %p3848_p4 = scmp.lt.s32.totalorder %s3842_s10, %s3842_s10 }
  0x27   :  { %p3849_p5 = por %p3848_p4, %p3847_p3 }
  0x29   :  { %p3850_p6 = pnand %p3849_p5, %p3843_p2 }
  0x2b   :  { %3853 = shalt.err (!%p3850_p6)
}
  0x2c   :  { %s3911_s9 = smov 128   ;;  %s3912_s11 = smov 8  }
  0x2d   :  { %39 = dma.hbm_to_vmem [thread:$0]  %s4505_s1, 512, %s34_s24, [#allocation7], %s3911_s9, %s3911_s9, %s3912_s11  }
  0x2e   :  { %s3913_s14 = smov [#allocation13]   ;;  %s3854_s19 = scalar_lea.hbm %s4507_s3, 4096 }
  0x2f   :  { %s57_s15 = sshll.u32 %s3913_s14, 4  ;;  %p3855_p7 = scmp.ne.s32.totalorder %s4507_s3, %s3854_s19  ;;  %s58_s15 = int_to_ptr.vmem [resolvable:$true] %s57_s15 }
  0x30   :  { %p3858_p8 = scmp.lt.u32.totalorder %s3854_s19, %s4507_s3 }
  0x32   :  { %p3860_p9 = pnand %p3858_p8, %p3855_p7 }
  0x34   :  { %3863 = shalt.err (!%p3860_p9)
}
  0x35   :  { %s3864_s25 = scalar_lea.vmem %s58_s15, 4096  ;;  %p3869_p11 = scmp.lt.s32.totalorder %s58_s15, %s58_s15 }
  0x36   :  { %p3865_p10 = scmp.ne.s32.totalorder %s58_s15, %s3864_s25  ;;  %p3870_p12 = scmp.lt.s32.totalorder %s3864_s25, %s3864_s25 }
  0x38   :  { %p3871_p13 = por %p3870_p12, %p3869_p11 }
  0x3a   :  { %p3872_p0 = pnand %p3871_p13, %p3865_p10 }
  0x3c   :  { %3875 = shalt.err (!%p3872_p0)
}
  0x3d   :  { %63 = dma.hbm_to_vmem [thread:$0]  %s4507_s3, 4096, %s58_s15, [#allocation12], %s3907_s0, %s3907_s0, %s3908_s18  }
  0x3e   :  { %3898 = dma.done.wait [#allocation9], 16  }
  0x3f   :  { %3899 = vsyncadd [#allocation9], 4294967280 }
  0x40   :  { %3900 = dma.done.wait [#allocation7], 512  }
  0x41   :  { %3901 = vsyncadd [#allocation7], 4294966784 }
  0x42   :  { %3902 = dma.done.wait [#allocation12], 8192  }
  0x43   :  { %3903 = vsyncadd [#allocation12], 4294959104 }
  0x44   :  { %82 = sfence }
  0x45   :  { %v3526_v0 = vld [vmem:[#allocation11 + $0x4] ss:$16 sps:$4 sm:$0xff]   ;;  %v3528_v1 = vld [vmem:[#allocation11 + $0xc] ss:$16 sps:$4 sm:$0xff]   ;;  %v3914_v2 = vmov 0   ;;  %s4009_s3 = sld [smem:[#allocation6]] }
  0x46   :  { %364 = vmatprep.mubr.bf16.mxu0 %v3914_v2  ;;  %405 = vmatprep.mubr.bf16.mxu1 %v3914_v2  ;;  %v3530_v3 = vld [vmem:[#allocation11] ss:$16 sps:$4 sm:$0xff]   ;;  %v3531_v4 = vld [vmem:[#allocation11 + $0x8] ss:$16 sps:$4 sm:$0xff]   ;;  %v3532_v5 = vld [vmem:[#allocation11 + $0x24] ss:$16 sps:$4 sm:$0xff]  }
  0x47   :  { %332 = vmatprep.subr.bf16.mxu0 %v3526_v0  ;;  %373 = vmatprep.subr.bf16.mxu1 %v3528_v1  ;;  %v3534_v6 = vld [vmem:[#allocation11 + $0x2c] ss:$16 sps:$4 sm:$0xff]   ;;  %v3536_v7 = vld [vmem:[#allocation11 + $0x20] ss:$16 sps:$4 sm:$0xff]   ;;  %v3537_v8 = vld [vmem:[#allocation11 + $0x28] ss:$16 sps:$4 sm:$0xff]  }
  0x48   :  { %333 = vmatpush1.bf16.msra.mxu0 %v3530_v3  ;;  %374 = vmatpush1.bf16.msra.mxu1 %v3531_v4  ;;  %v3538_v9 = vld [vmem:[#allocation11 + $0x44] ss:$16 sps:$4 sm:$0xff]   ;;  %v3540_v10 = vld [vmem:[#allocation11 + $0x4c] ss:$16 sps:$4 sm:$0xff]   ;;  %v3542_v11 = vld [vmem:[#allocation11 + $0x40] ss:$16 sps:$4 sm:$0xff]  }
  0x49   :  { %334 = vmatprep.subr.bf16.mxu0 %v3532_v5  ;;  %375 = vmatprep.subr.bf16.mxu1 %v3534_v6  ;;  %v3543_v12 = vld [vmem:[#allocation11 + $0x48] ss:$16 sps:$4 sm:$0xff]   ;;  %v3544_v13 = vld [vmem:[#allocation11 + $0x64] ss:$16 sps:$4 sm:$0xff]   ;;  %v3546_v14 = vld [vmem:[#allocation11 + $0x6c] ss:$16 sps:$4 sm:$0xff]  }
  0x4a   :  { %s4011_s0 = sld [smem:[#allocation6 + $0x1]]  ;;  %s4013_s18 = sld [smem:[#allocation6 + $0x2]]  ;;  %v3548_v15 = vld [vmem:[#allocation11 + $0x60] ss:$16 sps:$4 sm:$0xff]   ;;  %v3549_v16 = vld [vmem:[#allocation11 + $0x68] ss:$16 sps:$4 sm:$0xff]  }
  0x4b   :  { %s4015_s26 = sld [smem:[#allocation6 + $0x3]]  ;;  %v3550_v17 = vld [vmem:[#allocation11 + $0x84] ss:$16 sps:$4 sm:$0xff]   ;;  %v3552_v18 = vld [vmem:[#allocation11 + $0x8c] ss:$16 sps:$4 sm:$0xff]   ;;  %s4017_s27 = sld [smem:[#allocation6 + $0x4]] }
  0x4c   :  { %335 = vmatpush1.bf16.msra.mxu0 %v3536_v7  ;;  %376 = vmatpush1.bf16.msra.mxu1 %v3537_v8  ;;  %s4019_s29 = sld [smem:[#allocation6 + $0x5]]  ;;  %v3554_v19 = vld [vmem:[#allocation11 + $0x80] ss:$16 sps:$4 sm:$0xff]   ;;  %v3555_v20 = vld [vmem:[#allocation11 + $0x88] ss:$16 sps:$4 sm:$0xff]   ;;  %s4021_s30 = sld [smem:[#allocation6 + $0x6]] }
  0x4d   :  { %336 = vmatprep.subr.bf16.mxu0 %v3538_v9  ;;  %377 = vmatprep.subr.bf16.mxu1 %v3540_v10  ;;  %v3556_v21 = vld [vmem:[#allocation11 + $0xa4] ss:$16 sps:$4 sm:$0xff]   ;;  %v3558_v22 = vld [vmem:[#allocation11 + $0xac] ss:$16 sps:$4 sm:$0xff]   ;;  %s4023_s2 = sld [smem:[#allocation6 + $0x7]]  ;;  %s85_s28 = scalar_lea.vmem [#allocation10], %s4009_s3 }
  0x4e   :  { %v3560_v23 = vld [vmem:[#allocation11 + $0xa0] ss:$16 sps:$4 sm:$0xff]   ;;  %v3561_v24 = vld [vmem:[#allocation11 + $0xa8] ss:$16 sps:$4 sm:$0xff]   ;;  %v3562_v25 = vld [vmem:[#allocation11 + $0xc4] ss:$16 sps:$4 sm:$0xff]  }
  0x4f   :  { %v3564_v26 = vld [vmem:[#allocation11 + $0xcc] ss:$16 sps:$4 sm:$0xff]   ;;  %v86_v27 = vld [vmem:[%s85_s28] sm:$0x1]  ;;  %v3566_v29 = vld [vmem:[#allocation11 + $0xc0] ss:$16 sps:$4 sm:$0xff]  }
  0x50   :  { %337 = vmatpush1.bf16.msra.mxu0 %v3542_v11  ;;  %378 = vmatpush1.bf16.msra.mxu1 %v3543_v12  ;;  %s89_s10 = scalar_lea.vmem [#allocation10], %s4011_s0  ;;  %v3567_v30 = vld [vmem:[#allocation11 + $0xc8] ss:$16 sps:$4 sm:$0xff]   ;;  %87 = vst [vmem:[#allocation2] sm:$0x1] %v86_v27  ;;  %s93_s9 = scalar_lea.vmem [#allocation10], %s4013_s18 }
  0x51   :  { %338 = vmatprep.subr.bf16.mxu0 %v3544_v13  ;;  %379 = vmatprep.subr.bf16.mxu1 %v3546_v14  ;;  %v90_v28 = vld [vmem:[%s89_s10] sm:$0x1]  ;;  %s97_s11 = scalar_lea.vmem [#allocation10], %s4015_s26  ;;  %s101_s12 = scalar_lea.vmem [#allocation10], %s4017_s27  ;;  %v3570_v38 = vld [vmem:[#allocation11 + $0xec] ss:$16 sps:$4 sm:$0xff]  }
  0x52   :  { %91 = vst [vmem:[#allocation2 + $0x1] sm:$0x1] %v90_v28  ;;  %v94_v31 = vld [vmem:[%s93_s9] sm:$0x1]  ;;  %s105_s13 = scalar_lea.vmem [#allocation10], %s4019_s29  ;;  %s109_s14 = scalar_lea.vmem [#allocation10], %s4021_s30 }
  0x53   :  { %v98_v32 = vld [vmem:[%s97_s11] sm:$0x1]  ;;  %95 = vst [vmem:[#allocation2 + $0x2] sm:$0x1] %v94_v31  ;;  %s113_s15 = scalar_lea.vmem [#allocation10], %s4023_s2  ;;  %s3916_s2 = smov [#allocation14]  }
  0x54   :  { %339 = vmatpush1.bf16.msra.mxu0 %v3548_v15  ;;  %380 = vmatpush1.bf16.msra.mxu1 %v3549_v16  ;;  %v102_v33 = vld [vmem:[%s101_s12] sm:$0x1]  ;;  %99 = vst [vmem:[#allocation2 + $0x3] sm:$0x1] %v98_v32  ;;  %v3572_v39 = vld [vmem:[#allocation11 + $0xe0] ss:$16 sps:$4 sm:$0xff]   ;;  %v152_v16 = vlaneseq }
  0x55   :  { %340 = vmatprep.subr.bf16.mxu0 %v3550_v17  ;;  %381 = vmatprep.subr.bf16.mxu1 %v3552_v18  ;;  %103 = vst [vmem:[#allocation2 + $0x4] sm:$0x1] %v102_v33  ;;  %v106_v34 = vld [vmem:[%s105_s13] sm:$0x1]  ;;  %v3573_v40 = vld [vmem:[#allocation11 + $0xe8] ss:$16 sps:$4 sm:$0xff]  }
  0x56   :  { %v3568_v35 = vld [vmem:[#allocation11 + $0xe4] ss:$16 sps:$4 sm:$0xff]   ;;  %107 = vst [vmem:[#allocation2 + $0x5] sm:$0x1] %v106_v34  ;;  %v4035_v42 = vld [vmem:[#allocation13 + $0xc] ss:$16 sps:$4 sm:$0xff]  }
  0x57   :  { %v110_v36 = vld [vmem:[%s109_s14] sm:$0x1]  ;;  %v4037_v43 = vld [vmem:[#allocation13] ss:$16 sps:$4 sm:$0xff]   ;;  %v4039_v44 = vld [vmem:[#allocation13 + $0x8] ss:$16 sps:$4 sm:$0xff]  }
  0x58   :  { %341 = vmatpush1.bf16.msra.mxu0 %v3554_v19  ;;  %382 = vmatpush1.bf16.msra.mxu1 %v3555_v20  ;;  %v114_v37 = vld [vmem:[%s113_s15] sm:$0x1]  ;;  %111 = vst [vmem:[#allocation2 + $0x6] sm:$0x1] %v110_v36  ;;  %v4045_v48 = vld [vmem:[#allocation13 + $0x2c] ss:$16 sps:$4 sm:$0xff]  }
  0x59   :  { %342 = vmatprep.subr.bf16.mxu0 %v3556_v21  ;;  %383 = vmatprep.subr.bf16.mxu1 %v3558_v22  ;;  %115 = vst [vmem:[#allocation2 + $0x7] sm:$0x1] %v114_v37  ;;  %v4033_v41 = vld [vmem:[#allocation13 + $0x4] ss:$16 sps:$4 sm:$0xff]   ;;  %v4047_v49 = vld [vmem:[#allocation13 + $0x20] ss:$16 sps:$4 sm:$0xff]  }
  0x5a   :  { %v4043_v47 = vld [vmem:[#allocation13 + $0x24] ss:$16 sps:$4 sm:$0xff]   ;;  %v4051_v50 = vld [vmem:[#allocation13 + $0x28] ss:$16 sps:$4 sm:$0xff]   ;;  %v4057_v52 = vld [vmem:[#allocation13 + $0x4c] ss:$16 sps:$4 sm:$0xff]  }
  0x5b   :  { %v4055_v51 = vld [vmem:[#allocation13 + $0x44] ss:$16 sps:$4 sm:$0xff]   ;;  %v4061_v53 = vld [vmem:[#allocation13 + $0x40] ss:$16 sps:$4 sm:$0xff]   ;;  %v4065_v54 = vld [vmem:[#allocation13 + $0x48] ss:$16 sps:$4 sm:$0xff]  }
  0x5c   :  { %343 = vmatpush1.bf16.msra.mxu0 %v3560_v23  ;;  %384 = vmatpush1.bf16.msra.mxu1 %v3561_v24  ;;  %v4069_v55 = vld [vmem:[#allocation13 + $0x64] ss:$16 sps:$4 sm:$0xff]   ;;  %v4071_v56 = vld [vmem:[#allocation13 + $0x6c] ss:$16 sps:$4 sm:$0xff]   ;;  %v4073_v57 = vld [vmem:[#allocation13 + $0x60] ss:$16 sps:$4 sm:$0xff]  }
  0x5d   :  { %344 = vmatprep.subr.bf16.mxu0 %v3562_v25  ;;  %385 = vmatprep.subr.bf16.mxu1 %v3564_v26  ;;  %v4077_v58 = vld [vmem:[#allocation13 + $0x68] ss:$16 sps:$4 sm:$0xff]   ;;  %v4081_v59 = vld [vmem:[#allocation13 + $0x84] ss:$16 sps:$4 sm:$0xff]   ;;  %v4083_v60 = vld [vmem:[#allocation13 + $0x8c] ss:$16 sps:$4 sm:$0xff]  }
  0x5e   :  { %v418_v61 = vld [vmem:[%s4509_s5] sm:$0x1]  ;;  %v4088_v62 = vld [vmem:[#allocation13 + $0x80] ss:$16 sps:$4 sm:$0xff]   ;;  %v4090_v63 = vld [vmem:[#allocation13 + $0x88] ss:$16 sps:$4 sm:$0xff]  }
  0x5f   :  { %419 = vst [vmem:[#allocation4] sm:$0x1] %v418_v61  ;;  %v4092_v0 = vld [vmem:[#allocation13 + $0xa4] ss:$16 sps:$4 sm:$0xff]   ;;  %v4094_v1 = vld [vmem:[#allocation13 + $0xac] ss:$16 sps:$4 sm:$0xff]  }
  0x60   :  { %345 = vmatpush1.bf16.msra.mxu0 %v3566_v29  ;;  %386 = vmatpush1.bf16.msra.mxu1 %v3567_v30  ;;  %v116_v45 = vld [vmem:[#allocation2] sm:$0xff]  ;;  %v4100_v3 = vld [vmem:[#allocation13 + $0xa0] ss:$16 sps:$4 sm:$0xff]   ;;  %v153_v17 = vshrl.u32 %v152_v16, 7  ;;  %s3175_s28 = sshll.u32 %s3916_s2, 4  ;;  %s3176_s28 = int_to_ptr.vmem [resolvable:$true] %s3175_s28 }
  0x61   :  { %346 = vmatprep.subr.bf16.mxu0 %v3568_v35  ;;  %387 = vmatprep.subr.bf16.mxu1 %v3570_v38  ;;  %v117_v46 = vpack.c.bf16 %v116_v45, %v116_v45  ;;  %v4102_v4 = vld [vmem:[#allocation13 + $0xa8] ss:$16 sps:$4 sm:$0xff]   ;;  %v4104_v5 = vld [vmem:[#allocation13 + $0xc4] ss:$16 sps:$4 sm:$0xff]   ;;  %v4110_v6 = vld [vmem:[#allocation13 + $0xcc] ss:$16 sps:$4 sm:$0xff]   ;;  %p3881_p2 = scmp.lt.s32.totalorder %s3176_s28, %s3176_s28 }
  0x62   :  { %v4112_v7 = vld [vmem:[#allocation13 + $0xc0] ss:$16 sps:$4 sm:$0xff]   ;;  %v4114_v8 = vld [vmem:[#allocation13 + $0xc8] ss:$16 sps:$4 sm:$0xff]   ;;  %v4120_v9 = vld [vmem:[#allocation13 + $0xe4] ss:$16 sps:$4 sm:$0xff]  }
  0x63   :  { %v4122_v10 = vld [vmem:[#allocation13 + $0xec] ss:$16 sps:$4 sm:$0xff]   ;;  %v4126_v11 = vld [vmem:[#allocation13 + $0xe0] ss:$16 sps:$4 sm:$0xff]   ;;  %v4128_v12 = vld [vmem:[#allocation13 + $0xe8] ss:$16 sps:$4 sm:$0xff]  }
  0x64   :  { %347 = vmatpush1.bf16.msra.mxu0 %v3572_v39  ;;  %388 = vmatpush1.bf16.msra.mxu1 %v3573_v40  ;;  %v420_v15 = vld [vmem:[%s4510_s6] sm:$0x1]  ;;  %v154_v18 = vsub.s32 0, %v153_v17  ;;  %v162_v19 = vsub.s32 2, %v153_v17  ;;  %v158_v21 = vsub.s32 1, %v153_v17  ;;  %v166_v22 = vsub.s32 3, %v153_v17 }
  0x65   :  { %618 = vmatprep.subr.bf16.mxu0 %v4033_v41  ;;  %659 = vmatprep.subr.bf16.mxu1 %v4035_v42  ;;  %421 = vst [vmem:[#allocation5] sm:$0x1] %v420_v15  ;;  %v150_v20 = vld [vmem:[%s4508_s4] sm:$0xf]  ;;  %v3915_v39 = vmov 1966171168  }
  0x66   :  { %v422_v13 = vld [vmem:[#allocation4] sm:$0x1]  ;;  %v155_v23 = vrot.slane %v150_v20, %v154_v18  ;;  %v163_v24 = vrot.slane %v150_v20, %v162_v19  ;;  %v159_v25 = vrot.slane %v150_v20, %v158_v21  ;;  %v167_v26 = vrot.slane %v150_v20, %v166_v22  ;;  %s3876_s10 = scalar_lea.vmem %s3176_s28, 16  ;;  %s3880_s9 = scalar_lea.vmem %s3176_s28, 32 }
  0x67   :  { %365 = vmatmul.mubr.bf16.vlgmr.msra.gmra.mrb[0].mxu0 %v117_v46  ;;  %406 = vmatmul.mubr.bf16.vlgmr.msra.gmra.mrb[0].mxu1 %v117_v46  ;;  %v425_v14 = vpack.c.bf16 %v422_v13, %v422_v13  ;;  %v707_v40 = vunpack.c.l.s4 %v3915_v39  ;;  %p3877_p1 = scmp.ne.s32.totalorder %s3176_s28, %s3876_s10  ;;  %p3882_p3 = scmp.lt.s32.totalorder %s3880_s9, %s3876_s10 }
  0x68   :  { %619 = vmatpush1.bf16.msra.mxu0 %v4037_v43  ;;  %660 = vmatpush1.bf16.msra.mxu1 %v4039_v44 }
  0x69   :  { %620 = vmatprep.subr.bf16.mxu0 %v4043_v47  ;;  %661 = vmatprep.subr.bf16.mxu1 %v4045_v48  ;;  %v708_v45 = vunpack.c.0.s8 %v707_v40  ;;  %p3883_p4 = por %p3882_p3, %p3881_p2 }
  0x6a   :  { %650 = vmatprep.mubr.bf16.mxu0 %v3914_v2  ;;  %691 = vmatprep.mubr.bf16.mxu1 %v3914_v2 }
  0x6b   :  { %v4176_v46 = vsub.s32 %v708_v45, %v153_v17  ;;  %p3884_p5 = pnand %p3883_p4, %p3877_p1 }
  0x6c   :  { %621 = vmatpush1.bf16.msra.mxu0 %v4047_v49  ;;  %662 = vmatpush1.bf16.msra.mxu1 %v4051_v50  ;;  %v423_v40 = vld [vmem:[#allocation5] sm:$0x1] }
  0x6d   :  { %622 = vmatprep.subr.bf16.mxu0 %v4055_v51  ;;  %663 = vmatprep.subr.bf16.mxu1 %v4057_v52 }
  0x70   :  { %623 = vmatpush1.bf16.msra.mxu0 %v4061_v53  ;;  %664 = vmatpush1.bf16.msra.mxu1 %v4065_v54 }
  0x71   :  { %624 = vmatprep.subr.bf16.mxu0 %v4069_v55  ;;  %665 = vmatprep.subr.bf16.mxu1 %v4071_v56 }
  0x74   :  { %625 = vmatpush1.bf16.msra.mxu0 %v4073_v57  ;;  %666 = vmatpush1.bf16.msra.mxu1 %v4077_v58 }
  0x75   :  { %626 = vmatprep.subr.bf16.mxu0 %v4081_v59  ;;  %667 = vmatprep.subr.bf16.mxu1 %v4083_v60 }
  0x78   :  { %627 = vmatpush1.bf16.msra.mxu0 %v4088_v62  ;;  %668 = vmatpush1.bf16.msra.mxu1 %v4090_v63 }
  0x79   :  { %628 = vmatprep.subr.bf16.mxu0 %v4092_v0  ;;  %669 = vmatprep.subr.bf16.mxu1 %v4094_v1 }
  0x7c   :  { %629 = vmatpush1.bf16.msra.mxu0 %v4100_v3  ;;  %670 = vmatpush1.bf16.msra.mxu1 %v4102_v4 }
  0x7d   :  { %630 = vmatprep.subr.bf16.mxu0 %v4104_v5  ;;  %671 = vmatprep.subr.bf16.mxu1 %v4110_v6 }
  0x80   :  { %631 = vmatpush1.bf16.msra.mxu0 %v4112_v7  ;;  %672 = vmatpush1.bf16.msra.mxu1 %v4114_v8 }
  0x81   :  { %632 = vmatprep.subr.bf16.mxu0 %v4120_v9  ;;  %673 = vmatprep.subr.bf16.mxu1 %v4122_v10 }
  0x84   :  { %633 = vmatpush1.bf16.msra.mxu0 %v4126_v11  ;;  %674 = vmatpush1.bf16.msra.mxu1 %v4128_v12 }
  0x85   :  { %961 = vmatprep.subr.bf16.mxu0 %v4033_v41  ;;  %1002 = vmatprep.subr.bf16.mxu1 %v4035_v42 }
  0x87   :  { %651 = vmatmul.mubr.bf16.vlgmr.msra.gmra.mrb[4].mxu0 %v425_v14  ;;  %692 = vmatmul.mubr.bf16.vlgmr.msra.gmra.mrb[4].mxu1 %v425_v14 }
  0x88   :  { %962 = vmatpush1.bf16.msra.mxu0 %v4037_v43  ;;  %1003 = vmatpush1.bf16.msra.mxu1 %v4039_v44 }
  0x89   :  { %963 = vmatprep.subr.bf16.mxu0 %v4043_v47  ;;  %1004 = vmatprep.subr.bf16.mxu1 %v4045_v48 }
  0x8a   :  { %993 = vmatprep.mubr.bf16.mxu0 %v3914_v2  ;;  %1034 = vmatprep.mubr.bf16.mxu1 %v3914_v2 }
  0x8c   :  { %964 = vmatpush1.bf16.msra.mxu0 %v4047_v49  ;;  %1005 = vmatpush1.bf16.msra.mxu1 %v4051_v50 }
  0x8d   :  { %965 = vmatprep.subr.bf16.mxu0 %v4055_v51  ;;  %1006 = vmatprep.subr.bf16.mxu1 %v4057_v52 }
  0x90   :  { %966 = vmatpush1.bf16.msra.mxu0 %v4061_v53  ;;  %1007 = vmatpush1.bf16.msra.mxu1 %v4065_v54 }
  0x91   :  { %967 = vmatprep.subr.bf16.mxu0 %v4069_v55  ;;  %1008 = vmatprep.subr.bf16.mxu1 %v4071_v56 }
  0x94   :  { %968 = vmatpush1.bf16.msra.mxu0 %v4073_v57  ;;  %1009 = vmatpush1.bf16.msra.mxu1 %v4077_v58 }
  0x95   :  { %969 = vmatprep.subr.bf16.mxu0 %v4081_v59  ;;  %1010 = vmatprep.subr.bf16.mxu1 %v4083_v60 }
  0x98   :  { %970 = vmatpush1.bf16.msra.mxu0 %v4088_v62  ;;  %1011 = vmatpush1.bf16.msra.mxu1 %v4090_v63 }
  0x99   :  { %971 = vmatprep.subr.bf16.mxu0 %v4092_v0  ;;  %1012 = vmatprep.subr.bf16.mxu1 %v4094_v1 }
  0x9c   :  { %972 = vmatpush1.bf16.msra.mxu0 %v4100_v3  ;;  %1013 = vmatpush1.bf16.msra.mxu1 %v4102_v4 }
  0x9d   :  { %973 = vmatprep.subr.bf16.mxu0 %v4104_v5  ;;  %1014 = vmatprep.subr.bf16.mxu1 %v4110_v6 }
  0xa0   :  { %974 = vmatpush1.bf16.msra.mxu0 %v4112_v7  ;;  %1015 = vmatpush1.bf16.msra.mxu1 %v4114_v8 }
  0xa1   :  { %975 = vmatprep.subr.bf16.mxu0 %v4120_v9  ;;  %1016 = vmatprep.subr.bf16.mxu1 %v4122_v10 }
  0xa4   :  { %976 = vmatpush1.bf16.msra.mxu0 %v4126_v11  ;;  %1017 = vmatpush1.bf16.msra.mxu1 %v4128_v12 }
  0xa5   :  { %1304 = vmatprep.subr.bf16.mxu0 %v4033_v41  ;;  %1345 = vmatprep.subr.bf16.mxu1 %v4035_v42 }
 0x13a   :  { %v366_v27 = vpop.f32.mrb[0].mxu0  ;;  %v407_v28 = vpop.f32.mrb[0].mxu1 }
 0x13b   :  { %v367_v29 = vadd.f32 %v366_v27, %v155_v23  ;;  %v408_v30 = vadd.f32 %v407_v28, %v163_v24  ;;  %v368_v31 = vpop.f32.mrb[1].mxu0  ;;  %v409_v32 = vpop.f32.mrb[1].mxu1 }
 0x13c   :  { %v369_v33 = vadd.f32 %v368_v31, %v159_v25  ;;  %v410_v34 = vadd.f32 %v409_v32, %v167_v26  ;;  %v370_v35 = vpop.f32.mrb[2].mxu0  ;;  %v411_v36 = vpop.f32.mrb[2].mxu1 }
 0x13d   :  { %414 = vst [vmem:[#allocation3] sm:$0xff] %v367_v29  ;;  %416 = vst [vmem:[#allocation3 + $0x10] sm:$0xff] %v408_v30  ;;  %v371_v37 = vpop.f32.mrb[3].mxu0  ;;  %v412_v38 = vpop.f32.mrb[3].mxu1 }
 0x13e   :  { %415 = vst [vmem:[#allocation3 + $0x8] sm:$0xff] %v369_v33  ;;  %417 = vst [vmem:[#allocation3 + $0x18] sm:$0xff] %v410_v34 }
 0x145   :  { %v424_v27 = vld [vmem:[#allocation3] ss:$8 sm:$0xf] }
 0x15a   :  { %v652_v61 = vpop.f32.mrb[4].mxu0  ;;  %v693_v13 = vpop.f32.mrb[4].mxu1 }
 0x15b   :  { %v654_v14 = vpop.f32.mrb[5].mxu0  ;;  %v695_v15 = vpop.f32.mrb[5].mxu1 }
 0x15c   :  { %v704_v16 = vcombine.low %v652_v61, %v654_v14  ;;  %v705_v18 = vcombine.low %v693_v13, %v695_v15  ;;  %v656_v19 = vpop.f32.mrb[6].mxu0  ;;  %v697_v20 = vpop.f32.mrb[6].mxu1 }
 0x15d   :  { %v657_v21 = vpop.f32.mrb[7].mxu0  ;;  %v698_v22 = vpop.f32.mrb[7].mxu1 }
 0x15e   :  { %v712_v23 = vrot.slane %v704_v16, %v4176_v46  ;;  %v719_v24 = vrot.slane %v705_v18, %v4176_v46 }
 0x160   :  { %v720_v25 = vcombine.low %v712_v23, %v719_v24 }
 0x162   :  { %v727_v26 = vrot.slane %v720_v25, %v4176_v46 }
 0x164   :  { %v729_v17 = vadd.f32 %v727_v26, %v424_v27 }
 0x166   :  { %v3267_v28 = vmul.f32 -1.442695, %v729_v17  ;;  %v737_v29 = vrot.slane %v729_v17, 1  ;;  %v748_v31 = vrot.slane %v729_v17, 3  ;;  %v745_v34 = vrot.slane %v729_v17, 2 }
 0x168   :  { %3670 = vpow2.f32 %v3267_v28  ;;  %v3268_v30 = vmul.f32 -1.442695, %v737_v29  ;;  %v3269_v32 = vmul.f32 -1.442695, %v748_v31 }
 0x16a   :  { %3672 = vpow2.f32 %v3268_v30 }
 0x16b   :  { %3674 = vpow2.f32 %v3269_v32 }
 0x172   :  { %v3671_v33 = vpop.eup %3670 }
 0x173   :  { %v733_v35 = vadd.f32 1.0, %v3671_v33 }
 0x174   :  { %v3673_v36 = vpop.eup %3672 }
 0x175   :  { %3676 = vrcp.f32 %v733_v35  ;;  %v742_v37 = vadd.f32 1.0, %v3673_v36  ;;  %v3675_v38 = vpop.eup %3674 }
 0x176   :  { %3678 = vtanh.f32 %v745_v34  ;;  %v753_v13 = vadd.f32 1.0, %v3675_v38 }
 0x177   :  { %3680 = vrcp.f32 %v742_v37 }
 0x178   :  { %3682 = vrcp.f32 %v753_v13 }
 0x17f   :  { %v3677_v39 = vpop.eup %3676 }
 0x180   :  { %v3679_v45 = vpop.eup %3678 }
 0x181   :  { %v3681_v61 = vpop.eup %3680  ;;  %v757_v15 = vmul.f32 %v3679_v45, %v3677_v39 }
 0x182   :  { %v756_v14 = vmul.f32 %v3681_v61, %v423_v40  ;;  %v3683_v18 = vpop.eup %3682 }
 0x184   :  { %v758_v16 = vadd.f32 %v757_v15, %v756_v14 }
 0x186   :  { %3684 = vtanh.f32 %v758_v16  ;;  %762 = vst [vmem:[#allocation5] sm:$0x1] %v758_v16 }
 0x190   :  { %v3685_v19 = vpop.eup %3684 }
 0x191   :  { %v760_v20 = vmul.f32 %v3685_v19, %v3683_v18 }
 0x193   :  { %761 = vst [vmem:[#allocation4] sm:$0x1] %v760_v20  ;;  %763 = vst [vmem:[%s4511_s7] sm:$0x1] %v760_v20 }
 0x19a   :  { %v764_v21 = vld [vmem:[#allocation4] sm:$0x1] }
 0x19b   :  { %v768_v22 = vpack.c.bf16 %v764_v21, %v764_v21  ;;  %v765_v21 = vld [vmem:[#allocation5] sm:$0x1] }
 0x19d   :  { %994 = vmatmul.mubr.bf16.vlgmr.msra.gmra.mrb[8].mxu0 %v768_v22  ;;  %1035 = vmatmul.mubr.bf16.vlgmr.msra.gmra.mrb[8].mxu1 %v768_v22 }
 0x19e   :  { %1305 = vmatpush1.bf16.msra.mxu0 %v4037_v43  ;;  %1346 = vmatpush1.bf16.msra.mxu1 %v4039_v44 }
 0x19f   :  { %1306 = vmatprep.subr.bf16.mxu0 %v4043_v47  ;;  %1347 = vmatprep.subr.bf16.mxu1 %v4045_v48 }
 0x1a0   :  { %1336 = vmatprep.mubr.bf16.mxu0 %v3914_v2  ;;  %1377 = vmatprep.mubr.bf16.mxu1 %v3914_v2 }
 0x1a2   :  { %1307 = vmatpush1.bf16.msra.mxu0 %v4047_v49  ;;  %1348 = vmatpush1.bf16.msra.mxu1 %v4051_v50 }
 0x1a3   :  { %1308 = vmatprep.subr.bf16.mxu0 %v4055_v51  ;;  %1349 = vmatprep.subr.bf16.mxu1 %v4057_v52 }
 0x1a6   :  { %1309 = vmatpush1.bf16.msra.mxu0 %v4061_v53  ;;  %1350 = vmatpush1.bf16.msra.mxu1 %v4065_v54 }
 0x1a7   :  { %1310 = vmatprep.subr.bf16.mxu0 %v4069_v55  ;;  %1351 = vmatprep.subr.bf16.mxu1 %v4071_v56 }
 0x1aa   :  { %1311 = vmatpush1.bf16.msra.mxu0 %v4073_v57  ;;  %1352 = vmatpush1.bf16.msra.mxu1 %v4077_v58 }
 0x1ab   :  { %1312 = vmatprep.subr.bf16.mxu0 %v4081_v59  ;;  %1353 = vmatprep.subr.bf16.mxu1 %v4083_v60 }
 0x1ae   :  { %1313 = vmatpush1.bf16.msra.mxu0 %v4088_v62  ;;  %1354 = vmatpush1.bf16.msra.mxu1 %v4090_v63 }
 0x1af   :  { %1314 = vmatprep.subr.bf16.mxu0 %v4092_v0  ;;  %1355 = vmatprep.subr.bf16.mxu1 %v4094_v1 }
 0x1b2   :  { %1315 = vmatpush1.bf16.msra.mxu0 %v4100_v3  ;;  %1356 = vmatpush1.bf16.msra.mxu1 %v4102_v4 }
 0x1b3   :  { %1316 = vmatprep.subr.bf16.mxu0 %v4104_v5  ;;  %1357 = vmatprep.subr.bf16.mxu1 %v4110_v6 }
 0x1b6   :  { %1317 = vmatpush1.bf16.msra.mxu0 %v4112_v7  ;;  %1358 = vmatpush1.bf16.msra.mxu1 %v4114_v8 }
 0x1b7   :  { %1318 = vmatprep.subr.bf16.mxu0 %v4120_v9  ;;  %1359 = vmatprep.subr.bf16.mxu1 %v4122_v10 }
 0x1ba   :  { %1319 = vmatpush1.bf16.msra.mxu0 %v4126_v11  ;;  %1360 = vmatpush1.bf16.msra.mxu1 %v4128_v12 }
 0x1bb   :  { %1647 = vmatprep.subr.bf16.mxu0 %v4033_v41  ;;  %1688 = vmatprep.subr.bf16.mxu1 %v4035_v42  ;;  %v767_v41 = vld [vmem:[#allocation3 + $0x1] ss:$8 sm:$0xf] }
 0x270   :  { %v995_v23 = vpop.f32.mrb[8].mxu0  ;;  %v1036_v24 = vpop.f32.mrb[8].mxu1 }
 0x271   :  { %v997_v25 = vpop.f32.mrb[9].mxu0  ;;  %v1038_v26 = vpop.f32.mrb[9].mxu1 }
 0x272   :  { %v1047_v27 = vcombine.low %v995_v23, %v997_v25  ;;  %v1048_v17 = vcombine.low %v1036_v24, %v1038_v26  ;;  %v999_v28 = vpop.f32.mrb[10].mxu0  ;;  %v1040_v29 = vpop.f32.mrb[10].mxu1 }
 0x273   :  { %v1000_v30 = vpop.f32.mrb[11].mxu0  ;;  %v1041_v31 = vpop.f32.mrb[11].mxu1 }
 0x274   :  { %v1055_v32 = vrot.slane %v1047_v27, %v4176_v46  ;;  %v1062_v33 = vrot.slane %v1048_v17, %v4176_v46 }
 0x276   :  { %v1063_v34 = vcombine.low %v1055_v32, %v1062_v33 }
 0x278   :  { %v1070_v35 = vrot.slane %v1063_v34, %v4176_v46 }
 0x27a   :  { %v1072_v36 = vadd.f32 %v1070_v35, %v767_v41 }
 0x27c   :  { %v3302_v42 = vmul.f32 -1.442695, %v1072_v36  ;;  %v1080_v37 = vrot.slane %v1072_v36, 1  ;;  %v1091_v39 = vrot.slane %v1072_v36, 3  ;;  %v1088_v61 = vrot.slane %v1072_v36, 2 }
 0x27e   :  { %3686 = vpow2.f32 %v3302_v42  ;;  %v3303_v38 = vmul.f32 -1.442695, %v1080_v37  ;;  %v3304_v40 = vmul.f32 -1.442695, %v1091_v39  ;;  %v4266_v39 = vld [vmem:[#allocation13 + $0xc] ss:$16 sps:$4 sm:$0xff]  }
 0x280   :  { %3688 = vpow2.f32 %v3303_v38  ;;  %v4264_v38 = vld [vmem:[#allocation13 + $0x4] ss:$16 sps:$4 sm:$0xff]  }
 0x281   :  { %3690 = vpow2.f32 %v3304_v40  ;;  %v4268_v40 = vld [vmem:[#allocation13] ss:$16 sps:$4 sm:$0xff]  }
 0x288   :  { %v3687_v45 = vpop.eup %3686 }
 0x289   :  { %v1076_v13 = vadd.f32 1.0, %v3687_v45  ;;  %v4270_v45 = vld [vmem:[#allocation13 + $0x8] ss:$16 sps:$4 sm:$0xff]  }
 0x28a   :  { %v3689_v14 = vpop.eup %3688 }
 0x28b   :  { %3692 = vrcp.f32 %v1076_v13  ;;  %v1085_v15 = vadd.f32 1.0, %v3689_v14  ;;  %v3691_v16 = vpop.eup %3690  ;;  %v4278_v13 = vld [vmem:[#allocation13 + $0x2c] ss:$16 sps:$4 sm:$0xff]   ;;  %v4280_v14 = vld [vmem:[#allocation13 + $0x20] ss:$16 sps:$4 sm:$0xff]  }
 0x28c   :  { %3694 = vtanh.f32 %v1088_v61  ;;  %v1096_v22 = vadd.f32 1.0, %v3691_v16  ;;  %v4276_v61 = vld [vmem:[#allocation13 + $0x24] ss:$16 sps:$4 sm:$0xff]  }
 0x28d   :  { %3696 = vrcp.f32 %v1085_v15  ;;  %v4282_v15 = vld [vmem:[#allocation13 + $0x28] ss:$16 sps:$4 sm:$0xff]   ;;  %v4288_v16 = vld [vmem:[#allocation13 + $0x44] ss:$16 sps:$4 sm:$0xff]  }
 0x28e   :  { %3698 = vrcp.f32 %v1096_v22  ;;  %v4302_v22 = vld [vmem:[#allocation13 + $0x6c] ss:$16 sps:$4 sm:$0xff]  }
 0x295   :  { %v3693_v18 = vpop.eup %3692 }
 0x296   :  { %v3695_v19 = vpop.eup %3694 }
 0x297   :  { %v3697_v20 = vpop.eup %3696  ;;  %v1100_v24 = vmul.f32 %v3695_v19, %v3693_v18  ;;  %v4290_v18 = vld [vmem:[#allocation13 + $0x4c] ss:$16 sps:$4 sm:$0xff]   ;;  %v4292_v19 = vld [vmem:[#allocation13 + $0x40] ss:$16 sps:$4 sm:$0xff]  }
 0x298   :  { %v1099_v23 = vmul.f32 %v3697_v20, %v765_v21  ;;  %v3699_v26 = vpop.eup %3698  ;;  %v4294_v20 = vld [vmem:[#allocation13 + $0x48] ss:$16 sps:$4 sm:$0xff]   ;;  %v4300_v21 = vld [vmem:[#allocation13 + $0x64] ss:$16 sps:$4 sm:$0xff]  }
 0x29a   :  { %v1101_v25 = vadd.f32 %v1100_v24, %v1099_v23  ;;  %v4304_v23 = vld [vmem:[#allocation13 + $0x60] ss:$16 sps:$4 sm:$0xff]   ;;  %v4306_v24 = vld [vmem:[#allocation13 + $0x68] ss:$16 sps:$4 sm:$0xff]  }
 0x29c   :  { %3700 = vtanh.f32 %v1101_v25  ;;  %1105 = vst [vmem:[#allocation5] sm:$0x1] %v1101_v25  ;;  %v4312_v25 = vld [vmem:[#allocation13 + $0x84] ss:$16 sps:$4 sm:$0xff]  }
 0x2a3   :  { %v1108_v30 = vld [vmem:[#allocation5] sm:$0x1] }
 0x2a6   :  { %v3701_v27 = vpop.eup %3700 }
 0x2a7   :  { %v1103_v17 = vmul.f32 %v3701_v27, %v3699_v26  ;;  %v4314_v26 = vld [vmem:[#allocation13 + $0x8c] ss:$16 sps:$4 sm:$0xff]   ;;  %v4316_v27 = vld [vmem:[#allocation13 + $0x80] ss:$16 sps:$4 sm:$0xff]  }
 0x2a9   :  { %1104 = vst [vmem:[#allocation4] sm:$0x1] %v1103_v17  ;;  %1106 = vst [vmem:[%s4511_s7 + $0x1] sm:$0x1] %v1103_v17  ;;  %v4318_v17 = vld [vmem:[#allocation13 + $0x88] ss:$16 sps:$4 sm:$0xff]  }
 0x2b0   :  { %v1107_v28 = vld [vmem:[#allocation4] sm:$0x1] }
 0x2b1   :  { %v1111_v29 = vpack.c.bf16 %v1107_v28, %v1107_v28  ;;  %v4324_v28 = vld [vmem:[#allocation13 + $0xa4] ss:$16 sps:$4 sm:$0xff]  }
 0x2b3   :  { %1337 = vmatmul.mubr.bf16.vlgmr.msra.gmra.mrb[12].mxu0 %v1111_v29  ;;  %1378 = vmatmul.mubr.bf16.vlgmr.msra.gmra.mrb[12].mxu1 %v1111_v29  ;;  %v4326_v29 = vld [vmem:[#allocation13 + $0xac] ss:$16 sps:$4 sm:$0xff]  }
 0x2b4   :  { %1648 = vmatpush1.bf16.msra.mxu0 %v4037_v43  ;;  %1689 = vmatpush1.bf16.msra.mxu1 %v4039_v44 }
 0x2b5   :  { %1649 = vmatprep.subr.bf16.mxu0 %v4043_v47  ;;  %1690 = vmatprep.subr.bf16.mxu1 %v4045_v48 }
 0x2b6   :  { %1679 = vmatprep.mubr.bf16.mxu0 %v3914_v2  ;;  %1720 = vmatprep.mubr.bf16.mxu1 %v3914_v2 }
 0x2b8   :  { %1650 = vmatpush1.bf16.msra.mxu0 %v4047_v49  ;;  %1691 = vmatpush1.bf16.msra.mxu1 %v4051_v50 }
 0x2b9   :  { %1651 = vmatprep.subr.bf16.mxu0 %v4055_v51  ;;  %1692 = vmatprep.subr.bf16.mxu1 %v4057_v52 }
 0x2bc   :  { %1652 = vmatpush1.bf16.msra.mxu0 %v4061_v53  ;;  %1693 = vmatpush1.bf16.msra.mxu1 %v4065_v54 }
 0x2bd   :  { %1653 = vmatprep.subr.bf16.mxu0 %v4069_v55  ;;  %1694 = vmatprep.subr.bf16.mxu1 %v4071_v56 }
 0x2c0   :  { %1654 = vmatpush1.bf16.msra.mxu0 %v4073_v57  ;;  %1695 = vmatpush1.bf16.msra.mxu1 %v4077_v58 }
 0x2c1   :  { %1655 = vmatprep.subr.bf16.mxu0 %v4081_v59  ;;  %1696 = vmatprep.subr.bf16.mxu1 %v4083_v60  ;;  %v1110_v59 = vld [vmem:[#allocation3 + $0x2] ss:$8 sm:$0xf] }
 0x2c4   :  { %1656 = vmatpush1.bf16.msra.mxu0 %v4088_v62  ;;  %1697 = vmatpush1.bf16.msra.mxu1 %v4090_v63 }
 0x2c5   :  { %1657 = vmatprep.subr.bf16.mxu0 %v4092_v0  ;;  %1698 = vmatprep.subr.bf16.mxu1 %v4094_v1 }
 0x2c8   :  { %1658 = vmatpush1.bf16.msra.mxu0 %v4100_v3  ;;  %1699 = vmatpush1.bf16.msra.mxu1 %v4102_v4 }
 0x2c9   :  { %1659 = vmatprep.subr.bf16.mxu0 %v4104_v5  ;;  %1700 = vmatprep.subr.bf16.mxu1 %v4110_v6 }
 0x2cc   :  { %1660 = vmatpush1.bf16.msra.mxu0 %v4112_v7  ;;  %1701 = vmatpush1.bf16.msra.mxu1 %v4114_v8 }
 0x2cd   :  { %1661 = vmatprep.subr.bf16.mxu0 %v4120_v9  ;;  %1702 = vmatprep.subr.bf16.mxu1 %v4122_v10 }
 0x2d0   :  { %1662 = vmatpush1.bf16.msra.mxu0 %v4126_v11  ;;  %1703 = vmatpush1.bf16.msra.mxu1 %v4128_v12 }
 0x2d1   :  { %1990 = vmatprep.subr.bf16.mxu0 %v4264_v38  ;;  %2031 = vmatprep.subr.bf16.mxu1 %v4266_v39 }
 0x386   :  { %v1338_v43 = vpop.f32.mrb[12].mxu0  ;;  %v1379_v44 = vpop.f32.mrb[12].mxu1 }
 0x387   :  { %v1340_v47 = vpop.f32.mrb[13].mxu0  ;;  %v1381_v48 = vpop.f32.mrb[13].mxu1 }
 0x388   :  { %v1390_v49 = vcombine.low %v1338_v43, %v1340_v47  ;;  %v1391_v50 = vcombine.low %v1379_v44, %v1381_v48  ;;  %v1342_v51 = vpop.f32.mrb[14].mxu0  ;;  %v1383_v52 = vpop.f32.mrb[14].mxu1  ;;  %v4328_v43 = vld [vmem:[#allocation13 + $0xa0] ss:$16 sps:$4 sm:$0xff]   ;;  %v4330_v44 = vld [vmem:[#allocation13 + $0xa8] ss:$16 sps:$4 sm:$0xff]  }
 0x389   :  { %v1343_v53 = vpop.f32.mrb[15].mxu0  ;;  %v1384_v54 = vpop.f32.mrb[15].mxu1  ;;  %v4336_v47 = vld [vmem:[#allocation13 + $0xc0] ss:$16 sps:$4 sm:$0xff]   ;;  %v4338_v48 = vld [vmem:[#allocation13 + $0xc4] ss:$16 sps:$4 sm:$0xff]  }
 0x38a   :  { %v1398_v55 = vrot.slane %v1390_v49, %v4176_v46  ;;  %v1405_v56 = vrot.slane %v1391_v50, %v4176_v46  ;;  %v4340_v49 = vld [vmem:[#allocation13 + $0xc8] ss:$16 sps:$4 sm:$0xff]   ;;  %v4342_v50 = vld [vmem:[#allocation13 + $0xcc] ss:$16 sps:$4 sm:$0xff]   ;;  %v4344_v51 = vld [vmem:[#allocation13 + $0xe4] ss:$16 sps:$4 sm:$0xff]  }
 0x38b   :  { %v4347_v52 = vld [vmem:[#allocation13 + $0xec] ss:$16 sps:$4 sm:$0xff]   ;;  %v4352_v53 = vld [vmem:[#allocation13 + $0xe0] ss:$16 sps:$4 sm:$0xff]   ;;  %v4354_v54 = vld [vmem:[#allocation13 + $0xe8] ss:$16 sps:$4 sm:$0xff]  }
 0x38c   :  { %v1406_v57 = vcombine.low %v1398_v55, %v1405_v56 }
 0x38e   :  { %v1413_v58 = vrot.slane %v1406_v57, %v4176_v46 }
 0x390   :  { %v1415_v60 = vadd.f32 %v1413_v58, %v1110_v59 }
 0x392   :  { %v3337_v62 = vmul.f32 -1.442695, %v1415_v60  ;;  %v1423_v63 = vrot.slane %v1415_v60, 1  ;;  %v1434_v1 = vrot.slane %v1415_v60, 3  ;;  %v1431_v5 = vrot.slane %v1415_v60, 2 }
 0x394   :  { %3702 = vpow2.f32 %v3337_v62  ;;  %v3338_v0 = vmul.f32 -1.442695, %v1423_v63  ;;  %v3339_v3 = vmul.f32 -1.442695, %v1434_v1 }
 0x396   :  { %3704 = vpow2.f32 %v3338_v0 }
 0x397   :  { %3706 = vpow2.f32 %v3339_v3 }
 0x39e   :  { %v3703_v4 = vpop.eup %3702 }
 0x39f   :  { %v1419_v6 = vadd.f32 1.0, %v3703_v4 }
 0x3a0   :  { %v3705_v7 = vpop.eup %3704 }
 0x3a1   :  { %3708 = vrcp.f32 %v1419_v6  ;;  %v1428_v8 = vadd.f32 1.0, %v3705_v7  ;;  %v3707_v9 = vpop.eup %3706  ;;  %v1453_v7 = vld [vmem:[#allocation3 + $0x3] ss:$8 sm:$0xf] }
 0x3a2   :  { %3710 = vtanh.f32 %v1431_v5  ;;  %v1439_v31 = vadd.f32 1.0, %v3707_v9 }
 0x3a3   :  { %3712 = vrcp.f32 %v1428_v8 }
 0x3a4   :  { %3714 = vrcp.f32 %v1439_v31 }
 0x3ab   :  { %v3709_v10 = vpop.eup %3708 }
 0x3ac   :  { %v3711_v11 = vpop.eup %3710 }
 0x3ad   :  { %v3713_v12 = vpop.eup %3712  ;;  %v1443_v33 = vmul.f32 %v3711_v11, %v3709_v10 }
 0x3ae   :  { %v1442_v32 = vmul.f32 %v3713_v12, %v1108_v30  ;;  %v3715_v35 = vpop.eup %3714 }
 0x3b0   :  { %v1444_v34 = vadd.f32 %v1443_v33, %v1442_v32 }
 0x3b2   :  { %3716 = vtanh.f32 %v1444_v34  ;;  %1448 = vst [vmem:[#allocation5] sm:$0x1] %v1444_v34 }
 0x3bc   :  { %v3717_v41 = vpop.eup %3716 }
 0x3bd   :  { %v1446_v36 = vmul.f32 %v3717_v41, %v3715_v35 }
 0x3bf   :  { %1447 = vst [vmem:[#allocation4] sm:$0x1] %v1446_v36  ;;  %1449 = vst [vmem:[%s4511_s7 + $0x2] sm:$0x1] %v1446_v36 }
 0x3c6   :  { %v1450_v42 = vld [vmem:[#allocation4] sm:$0x1] }
 0x3c7   :  { %v1454_v37 = vpack.c.bf16 %v1450_v42, %v1450_v42 }
 0x3c9   :  { %1680 = vmatmul.mubr.bf16.vlgmr.msra.gmra.mrb[16].mxu0 %v1454_v37  ;;  %1721 = vmatmul.mubr.bf16.vlgmr.msra.gmra.mrb[16].mxu1 %v1454_v37 }
 0x3ca   :  { %2022 = vmatprep.mubr.bf16.mxu0 %v3914_v2  ;;  %2063 = vmatprep.mubr.bf16.mxu1 %v3914_v2 }
 0x3cb   :  { %1991 = vmatpush1.bf16.msra.mxu0 %v4268_v40  ;;  %2032 = vmatpush1.bf16.msra.mxu1 %v4270_v45 }
 0x3cc   :  { %1992 = vmatprep.subr.bf16.mxu0 %v4276_v61  ;;  %2033 = vmatprep.subr.bf16.mxu1 %v4278_v13 }
 0x3cf   :  { %1993 = vmatpush1.bf16.msra.mxu0 %v4280_v14  ;;  %2034 = vmatpush1.bf16.msra.mxu1 %v4282_v15 }
 0x3d0   :  { %1994 = vmatprep.subr.bf16.mxu0 %v4288_v16  ;;  %2035 = vmatprep.subr.bf16.mxu1 %v4290_v18 }
 0x3d3   :  { %1995 = vmatpush1.bf16.msra.mxu0 %v4292_v19  ;;  %2036 = vmatpush1.bf16.msra.mxu1 %v4294_v20 }
 0x3d4   :  { %1996 = vmatprep.subr.bf16.mxu0 %v4300_v21  ;;  %2037 = vmatprep.subr.bf16.mxu1 %v4302_v22 }
 0x3d7   :  { %1997 = vmatpush1.bf16.msra.mxu0 %v4304_v23  ;;  %2038 = vmatpush1.bf16.msra.mxu1 %v4306_v24 }
 0x3d8   :  { %1998 = vmatprep.subr.bf16.mxu0 %v4312_v25  ;;  %2039 = vmatprep.subr.bf16.mxu1 %v4314_v26 }
 0x3db   :  { %1999 = vmatpush1.bf16.msra.mxu0 %v4316_v27  ;;  %2040 = vmatpush1.bf16.msra.mxu1 %v4318_v17 }
 0x3dc   :  { %2000 = vmatprep.subr.bf16.mxu0 %v4324_v28  ;;  %2041 = vmatprep.subr.bf16.mxu1 %v4326_v29 }
 0x3df   :  { %2001 = vmatpush1.bf16.msra.mxu0 %v4328_v43  ;;  %2042 = vmatpush1.bf16.msra.mxu1 %v4330_v44 }
 0x3e0   :  { %2002 = vmatprep.subr.bf16.mxu0 %v4338_v48  ;;  %2043 = vmatprep.subr.bf16.mxu1 %v4342_v50 }
 0x3e3   :  { %2003 = vmatpush1.bf16.msra.mxu0 %v4336_v47  ;;  %2044 = vmatpush1.bf16.msra.mxu1 %v4340_v49 }
 0x3e4   :  { %2004 = vmatprep.subr.bf16.mxu0 %v4344_v51  ;;  %2045 = vmatprep.subr.bf16.mxu1 %v4347_v52 }
 0x3e7   :  { %2005 = vmatpush1.bf16.msra.mxu0 %v4352_v53  ;;  %2046 = vmatpush1.bf16.msra.mxu1 %v4354_v54 }
 0x3e8   :  { %2333 = vmatprep.subr.bf16.mxu0 %v4264_v38  ;;  %2374 = vmatprep.subr.bf16.mxu1 %v4266_v39 }
 0x49c   :  { %v1681_v55 = vpop.f32.mrb[16].mxu0  ;;  %v1722_v56 = vpop.f32.mrb[16].mxu1 }
 0x49d   :  { %v1683_v57 = vpop.f32.mrb[17].mxu0  ;;  %v1724_v58 = vpop.f32.mrb[17].mxu1 }
 0x49e   :  { %v1733_v59 = vcombine.low %v1681_v55, %v1683_v57  ;;  %v1734_v60 = vcombine.low %v1722_v56, %v1724_v58  ;;  %v1685_v62 = vpop.f32.mrb[18].mxu0  ;;  %v1726_v63 = vpop.f32.mrb[18].mxu1  ;;  %v1451_v55 = vld [vmem:[#allocation5] sm:$0x1] }
 0x49f   :  { %v1686_v0 = vpop.f32.mrb[19].mxu0  ;;  %v1727_v1 = vpop.f32.mrb[19].mxu1 }
 0x4a0   :  { %v1741_v3 = vrot.slane %v1733_v59, %v4176_v46  ;;  %v1748_v4 = vrot.slane %v1734_v60, %v4176_v46 }
 0x4a2   :  { %v1749_v5 = vcombine.low %v1741_v3, %v1748_v4 }
 0x4a4   :  { %v1756_v6 = vrot.slane %v1749_v5, %v4176_v46 }
 0x4a6   :  { %v1758_v8 = vadd.f32 %v1756_v6, %v1453_v7 }
 0x4a8   :  { %v3372_v9 = vmul.f32 -1.442695, %v1758_v8  ;;  %v1766_v10 = vrot.slane %v1758_v8, 1  ;;  %v1777_v12 = vrot.slane %v1758_v8, 3  ;;  %v1774_v32 = vrot.slane %v1758_v8, 2 }
 0x4aa   :  { %3718 = vpow2.f32 %v3372_v9  ;;  %v3373_v11 = vmul.f32 -1.442695, %v1766_v10  ;;  %v3374_v30 = vmul.f32 -1.442695, %v1777_v12 }
 0x4ac   :  { %3720 = vpow2.f32 %v3373_v11 }
 0x4ad   :  { %3722 = vpow2.f32 %v3374_v30 }
 0x4b4   :  { %v3719_v31 = vpop.eup %3718 }
 0x4b5   :  { %v1762_v33 = vadd.f32 1.0, %v3719_v31 }
 0x4b6   :  { %v3721_v34 = vpop.eup %3720 }
 0x4b7   :  { %3724 = vrcp.f32 %v1762_v33  ;;  %v1771_v35 = vadd.f32 1.0, %v3721_v34  ;;  %v3723_v41 = vpop.eup %3722  ;;  %v1796_v34 = vld [vmem:[#allocation3 + $0x4] ss:$8 sm:$0xf] }
 0x4b8   :  { %3726 = vtanh.f32 %v1774_v32  ;;  %v1782_v56 = vadd.f32 1.0, %v3723_v41 }
 0x4b9   :  { %3728 = vrcp.f32 %v1771_v35 }
 0x4ba   :  { %3730 = vrcp.f32 %v1782_v56 }
 0x4c1   :  { %v3725_v36 = vpop.eup %3724 }
 0x4c2   :  { %v3727_v42 = vpop.eup %3726 }
 0x4c3   :  { %v3729_v37 = vpop.eup %3728  ;;  %v1786_v58 = vmul.f32 %v3727_v42, %v3725_v36 }
 0x4c4   :  { %v1785_v57 = vmul.f32 %v3729_v37, %v1451_v55  ;;  %v3731_v60 = vpop.eup %3730 }
 0x4c6   :  { %v1787_v59 = vadd.f32 %v1786_v58, %v1785_v57 }
 0x4c8   :  { %3732 = vtanh.f32 %v1787_v59  ;;  %1791 = vst [vmem:[#allocation5] sm:$0x1] %v1787_v59 }
 0x4d2   :  { %v3733_v62 = vpop.eup %3732 }
 0x4d3   :  { %v1789_v63 = vmul.f32 %v3733_v62, %v3731_v60 }
 0x4d5   :  { %1792 = vst [vmem:[%s4511_s7 + $0x3] sm:$0x1] %v1789_v63  ;;  %1790 = vst [vmem:[#allocation4] sm:$0x1] %v1789_v63 }
 0x4dc   :  { %v1793_v0 = vld [vmem:[#allocation4] sm:$0x1] }
 0x4dd   :  { %v1797_v1 = vpack.c.bf16 %v1793_v0, %v1793_v0 }
 0x4df   :  { %2023 = vmatmul.mubr.bf16.vlgmr.msra.gmra.mrb[20].mxu0 %v1797_v1  ;;  %2064 = vmatmul.mubr.bf16.vlgmr.msra.gmra.mrb[20].mxu1 %v1797_v1 }
 0x4e0   :  { %2334 = vmatpush1.bf16.msra.mxu0 %v4268_v40  ;;  %2375 = vmatpush1.bf16.msra.mxu1 %v4270_v45 }
 0x4e1   :  { %2335 = vmatprep.subr.bf16.mxu0 %v4276_v61  ;;  %2376 = vmatprep.subr.bf16.mxu1 %v4278_v13 }
 0x4e2   :  { %2365 = vmatprep.mubr.bf16.mxu0 %v3914_v2  ;;  %2406 = vmatprep.mubr.bf16.mxu1 %v3914_v2 }
 0x4e4   :  { %2336 = vmatpush1.bf16.msra.mxu0 %v4280_v14  ;;  %2377 = vmatpush1.bf16.msra.mxu1 %v4282_v15 }
 0x4e5   :  { %2337 = vmatprep.subr.bf16.mxu0 %v4288_v16  ;;  %2378 = vmatprep.subr.bf16.mxu1 %v4290_v18 }
 0x4e8   :  { %2338 = vmatpush1.bf16.msra.mxu0 %v4292_v19  ;;  %2379 = vmatpush1.bf16.msra.mxu1 %v4294_v20 }
 0x4e9   :  { %2339 = vmatprep.subr.bf16.mxu0 %v4300_v21  ;;  %2380 = vmatprep.subr.bf16.mxu1 %v4302_v22 }
 0x4ec   :  { %2340 = vmatpush1.bf16.msra.mxu0 %v4304_v23  ;;  %2381 = vmatpush1.bf16.msra.mxu1 %v4306_v24 }
 0x4ed   :  { %2341 = vmatprep.subr.bf16.mxu0 %v4312_v25  ;;  %2382 = vmatprep.subr.bf16.mxu1 %v4314_v26 }
 0x4f0   :  { %2342 = vmatpush1.bf16.msra.mxu0 %v4316_v27  ;;  %2383 = vmatpush1.bf16.msra.mxu1 %v4318_v17 }
 0x4f1   :  { %2343 = vmatprep.subr.bf16.mxu0 %v4324_v28  ;;  %2384 = vmatprep.subr.bf16.mxu1 %v4326_v29 }
 0x4f4   :  { %2344 = vmatpush1.bf16.msra.mxu0 %v4328_v43  ;;  %2385 = vmatpush1.bf16.msra.mxu1 %v4330_v44 }
 0x4f5   :  { %2345 = vmatprep.subr.bf16.mxu0 %v4338_v48  ;;  %2386 = vmatprep.subr.bf16.mxu1 %v4342_v50 }
 0x4f8   :  { %2346 = vmatpush1.bf16.msra.mxu0 %v4336_v47  ;;  %2387 = vmatpush1.bf16.msra.mxu1 %v4340_v49 }
 0x4f9   :  { %2347 = vmatprep.subr.bf16.mxu0 %v4344_v51  ;;  %2388 = vmatprep.subr.bf16.mxu1 %v4347_v52 }
 0x4fc   :  { %2348 = vmatpush1.bf16.msra.mxu0 %v4352_v53  ;;  %2389 = vmatpush1.bf16.msra.mxu1 %v4354_v54 }
 0x4fd   :  { %2676 = vmatprep.subr.bf16.mxu0 %v4264_v38  ;;  %2717 = vmatprep.subr.bf16.mxu1 %v4266_v39 }
 0x5b2   :  { %v2024_v3 = vpop.f32.mrb[20].mxu0  ;;  %v2065_v4 = vpop.f32.mrb[20].mxu1 }
 0x5b3   :  { %v2026_v5 = vpop.f32.mrb[21].mxu0  ;;  %v2067_v6 = vpop.f32.mrb[21].mxu1 }
 0x5b4   :  { %v2076_v7 = vcombine.low %v2024_v3, %v2026_v5  ;;  %v2077_v8 = vcombine.low %v2065_v4, %v2067_v6  ;;  %v2028_v9 = vpop.f32.mrb[22].mxu0  ;;  %v2069_v10 = vpop.f32.mrb[22].mxu1  ;;  %v1794_v3 = vld [vmem:[#allocation5] sm:$0x1] }
 0x5b5   :  { %v2029_v11 = vpop.f32.mrb[23].mxu0  ;;  %v2070_v12 = vpop.f32.mrb[23].mxu1 }
 0x5b6   :  { %v2084_v30 = vrot.slane %v2076_v7, %v4176_v46  ;;  %v2091_v31 = vrot.slane %v2077_v8, %v4176_v46 }
 0x5b8   :  { %v2092_v32 = vcombine.low %v2084_v30, %v2091_v31 }
 0x5ba   :  { %v2099_v33 = vrot.slane %v2092_v32, %v4176_v46 }
 0x5bc   :  { %v2101_v35 = vadd.f32 %v2099_v33, %v1796_v34 }
 0x5be   :  { %v3407_v41 = vmul.f32 -1.442695, %v2101_v35  ;;  %v2109_v36 = vrot.slane %v2101_v35, 1  ;;  %v2120_v37 = vrot.slane %v2101_v35, 3  ;;  %v2117_v57 = vrot.slane %v2101_v35, 2 }
 0x5c0   :  { %3734 = vpow2.f32 %v3407_v41  ;;  %v3408_v42 = vmul.f32 -1.442695, %v2109_v36  ;;  %v3409_v55 = vmul.f32 -1.442695, %v2120_v37 }
 0x5c2   :  { %3736 = vpow2.f32 %v3408_v42 }
 0x5c3   :  { %3738 = vpow2.f32 %v3409_v55 }
 0x5ca   :  { %v3735_v56 = vpop.eup %3734 }
 0x5cb   :  { %v2105_v58 = vadd.f32 1.0, %v3735_v56 }
 0x5cc   :  { %v3737_v59 = vpop.eup %3736 }
 0x5cd   :  { %3740 = vrcp.f32 %v2105_v58  ;;  %v2114_v60 = vadd.f32 1.0, %v3737_v59  ;;  %v3739_v62 = vpop.eup %3738 }
 0x5ce   :  { %3742 = vtanh.f32 %v2117_v57  ;;  %v2125_v4 = vadd.f32 1.0, %v3739_v62 }
 0x5cf   :  { %3744 = vrcp.f32 %v2114_v60 }
 0x5d0   :  { %3746 = vrcp.f32 %v2125_v4 }
 0x5d7   :  { %v3741_v63 = vpop.eup %3740 }
 0x5d8   :  { %v3743_v0 = vpop.eup %3742 }
 0x5d9   :  { %v3745_v1 = vpop.eup %3744  ;;  %v2129_v6 = vmul.f32 %v3743_v0, %v3741_v63 }
 0x5da   :  { %v2128_v5 = vmul.f32 %v3745_v1, %v1794_v3  ;;  %v3747_v8 = vpop.eup %3746 }
 0x5dc   :  { %v2130_v7 = vadd.f32 %v2129_v6, %v2128_v5 }
 0x5de   :  { %3748 = vtanh.f32 %v2130_v7  ;;  %2134 = vst [vmem:[#allocation5] sm:$0x1] %v2130_v7 }
 0x5e8   :  { %v3749_v9 = vpop.eup %3748 }
 0x5e9   :  { %v2132_v10 = vmul.f32 %v3749_v9, %v3747_v8 }
 0x5eb   :  { %2135 = vst [vmem:[%s4511_s7 + $0x4] sm:$0x1] %v2132_v10  ;;  %2133 = vst [vmem:[#allocation4] sm:$0x1] %v2132_v10 }
 0x5f2   :  { %v2136_v11 = vld [vmem:[#allocation4] sm:$0x1] }
 0x5f3   :  { %v2140_v12 = vpack.c.bf16 %v2136_v11, %v2136_v11  ;;  %v2137_v11 = vld [vmem:[#allocation5] sm:$0x1] }
 0x5f5   :  { %2366 = vmatmul.mubr.bf16.vlgmr.msra.gmra.mrb[24].mxu0 %v2140_v12  ;;  %2407 = vmatmul.mubr.bf16.vlgmr.msra.gmra.mrb[24].mxu1 %v2140_v12 }
 0x5f6   :  { %2677 = vmatpush1.bf16.msra.mxu0 %v4268_v40  ;;  %2718 = vmatpush1.bf16.msra.mxu1 %v4270_v45 }
 0x5f7   :  { %2678 = vmatprep.subr.bf16.mxu0 %v4276_v61  ;;  %2719 = vmatprep.subr.bf16.mxu1 %v4278_v13 }
 0x5f8   :  { %2708 = vmatprep.mubr.bf16.mxu0 %v3914_v2  ;;  %2749 = vmatprep.mubr.bf16.mxu1 %v3914_v2 }
 0x5fa   :  { %2679 = vmatpush1.bf16.msra.mxu0 %v4280_v14  ;;  %2720 = vmatpush1.bf16.msra.mxu1 %v4282_v15 }
 0x5fb   :  { %2680 = vmatprep.subr.bf16.mxu0 %v4288_v16  ;;  %2721 = vmatprep.subr.bf16.mxu1 %v4290_v18 }
 0x5fe   :  { %2681 = vmatpush1.bf16.msra.mxu0 %v4292_v19  ;;  %2722 = vmatpush1.bf16.msra.mxu1 %v4294_v20 }
 0x5ff   :  { %2682 = vmatprep.subr.bf16.mxu0 %v4300_v21  ;;  %2723 = vmatprep.subr.bf16.mxu1 %v4302_v22 }
 0x602   :  { %2683 = vmatpush1.bf16.msra.mxu0 %v4304_v23  ;;  %2724 = vmatpush1.bf16.msra.mxu1 %v4306_v24 }
 0x603   :  { %2684 = vmatprep.subr.bf16.mxu0 %v4312_v25  ;;  %2725 = vmatprep.subr.bf16.mxu1 %v4314_v26 }
 0x606   :  { %2685 = vmatpush1.bf16.msra.mxu0 %v4316_v27  ;;  %2726 = vmatpush1.bf16.msra.mxu1 %v4318_v17 }
 0x607   :  { %2686 = vmatprep.subr.bf16.mxu0 %v4324_v28  ;;  %2727 = vmatprep.subr.bf16.mxu1 %v4326_v29 }
 0x60a   :  { %2687 = vmatpush1.bf16.msra.mxu0 %v4328_v43  ;;  %2728 = vmatpush1.bf16.msra.mxu1 %v4330_v44 }
 0x60b   :  { %2688 = vmatprep.subr.bf16.mxu0 %v4338_v48  ;;  %2729 = vmatprep.subr.bf16.mxu1 %v4342_v50 }
 0x60e   :  { %2689 = vmatpush1.bf16.msra.mxu0 %v4336_v47  ;;  %2730 = vmatpush1.bf16.msra.mxu1 %v4340_v49 }
 0x60f   :  { %2690 = vmatprep.subr.bf16.mxu0 %v4344_v51  ;;  %2731 = vmatprep.subr.bf16.mxu1 %v4347_v52 }
 0x612   :  { %2691 = vmatpush1.bf16.msra.mxu0 %v4352_v53  ;;  %2732 = vmatpush1.bf16.msra.mxu1 %v4354_v54 }
 0x613   :  { %3019 = vmatprep.subr.bf16.mxu0 %v4264_v38  ;;  %3060 = vmatprep.subr.bf16.mxu1 %v4266_v39  ;;  %v2139_v38 = vld [vmem:[#allocation3 + $0x5] ss:$8 sm:$0xf] }
 0x6c8   :  { %v2367_v30 = vpop.f32.mrb[24].mxu0  ;;  %v2408_v31 = vpop.f32.mrb[24].mxu1 }
 0x6c9   :  { %v2369_v32 = vpop.f32.mrb[25].mxu0  ;;  %v2410_v33 = vpop.f32.mrb[25].mxu1 }
 0x6ca   :  { %v2419_v34 = vcombine.low %v2367_v30, %v2369_v32  ;;  %v2420_v35 = vcombine.low %v2408_v31, %v2410_v33  ;;  %v2371_v41 = vpop.f32.mrb[26].mxu0  ;;  %v2412_v36 = vpop.f32.mrb[26].mxu1 }
 0x6cb   :  { %v2372_v42 = vpop.f32.mrb[27].mxu0  ;;  %v2413_v37 = vpop.f32.mrb[27].mxu1 }
 0x6cc   :  { %v2427_v55 = vrot.slane %v2419_v34, %v4176_v46  ;;  %v2434_v56 = vrot.slane %v2420_v35, %v4176_v46 }
 0x6ce   :  { %v2435_v57 = vcombine.low %v2427_v55, %v2434_v56 }
 0x6d0   :  { %v2442_v58 = vrot.slane %v2435_v57, %v4176_v46 }
 0x6d2   :  { %v2444_v59 = vadd.f32 %v2442_v58, %v2139_v38 }
 0x6d4   :  { %v3442_v39 = vmul.f32 -1.442695, %v2444_v59  ;;  %v2452_v60 = vrot.slane %v2444_v59, 1  ;;  %v2463_v63 = vrot.slane %v2444_v59, 3  ;;  %v2460_v3 = vrot.slane %v2444_v59, 2 }
 0x6d6   :  { %3750 = vpow2.f32 %v3442_v39  ;;  %v3443_v62 = vmul.f32 -1.442695, %v2452_v60  ;;  %v3444_v0 = vmul.f32 -1.442695, %v2463_v63 }
 0x6d8   :  { %3752 = vpow2.f32 %v3443_v62 }
 0x6d9   :  { %3754 = vpow2.f32 %v3444_v0 }
 0x6e0   :  { %v3751_v1 = vpop.eup %3750 }
 0x6e1   :  { %v2448_v4 = vadd.f32 1.0, %v3751_v1 }
 0x6e2   :  { %v3753_v5 = vpop.eup %3752 }
 0x6e3   :  { %3756 = vrcp.f32 %v2448_v4  ;;  %v2457_v6 = vadd.f32 1.0, %v3753_v5  ;;  %v3755_v7 = vpop.eup %3754 }
 0x6e4   :  { %3758 = vtanh.f32 %v2460_v3  ;;  %v2468_v12 = vadd.f32 1.0, %v3755_v7 }
 0x6e5   :  { %3760 = vrcp.f32 %v2457_v6 }
 0x6e6   :  { %3762 = vrcp.f32 %v2468_v12  ;;  %v2825_v12 = vld [vmem:[#allocation3 + $0x7] ss:$8 sm:$0xf] }
 0x6ed   :  { %v3757_v8 = vpop.eup %3756 }
 0x6ee   :  { %v3759_v9 = vpop.eup %3758 }
 0x6ef   :  { %v3761_v10 = vpop.eup %3760  ;;  %v2472_v31 = vmul.f32 %v3759_v9, %v3757_v8 }
 0x6f0   :  { %v2471_v30 = vmul.f32 %v3761_v10, %v2137_v11  ;;  %v3763_v33 = vpop.eup %3762 }
 0x6f2   :  { %v2473_v32 = vadd.f32 %v2472_v31, %v2471_v30 }
 0x6f4   :  { %3764 = vtanh.f32 %v2473_v32  ;;  %2477 = vst [vmem:[#allocation5] sm:$0x1] %v2473_v32 }
 0x6fe   :  { %v3765_v34 = vpop.eup %3764 }
 0x6ff   :  { %v2475_v35 = vmul.f32 %v3765_v34, %v3763_v33 }
 0x701   :  { %2478 = vst [vmem:[%s4511_s7 + $0x5] sm:$0x1] %v2475_v35  ;;  %2476 = vst [vmem:[#allocation4] sm:$0x1] %v2475_v35 }
 0x708   :  { %v2479_v41 = vld [vmem:[#allocation4] sm:$0x1] }
 0x709   :  { %v2483_v36 = vpack.c.bf16 %v2479_v41, %v2479_v41 }
 0x70b   :  { %2709 = vmatmul.mubr.bf16.vlgmr.msra.gmra.mrb[28].mxu0 %v2483_v36  ;;  %2750 = vmatmul.mubr.bf16.vlgmr.msra.gmra.mrb[28].mxu1 %v2483_v36 }
 0x70c   :  { %3020 = vmatpush1.bf16.msra.mxu0 %v4268_v40  ;;  %3061 = vmatpush1.bf16.msra.mxu1 %v4270_v45 }
 0x70d   :  { %3021 = vmatprep.subr.bf16.mxu0 %v4276_v61  ;;  %3062 = vmatprep.subr.bf16.mxu1 %v4278_v13 }
 0x70e   :  { %3051 = vmatprep.mubr.bf16.mxu0 %v3914_v2  ;;  %3092 = vmatprep.mubr.bf16.mxu1 %v3914_v2 }
 0x710   :  { %3022 = vmatpush1.bf16.msra.mxu0 %v4280_v14  ;;  %3063 = vmatpush1.bf16.msra.mxu1 %v4282_v15 }
 0x711   :  { %3023 = vmatprep.subr.bf16.mxu0 %v4288_v16  ;;  %3064 = vmatprep.subr.bf16.mxu1 %v4290_v18 }
 0x714   :  { %3024 = vmatpush1.bf16.msra.mxu0 %v4292_v19  ;;  %3065 = vmatpush1.bf16.msra.mxu1 %v4294_v20 }
 0x715   :  { %3025 = vmatprep.subr.bf16.mxu0 %v4300_v21  ;;  %3066 = vmatprep.subr.bf16.mxu1 %v4302_v22 }
 0x718   :  { %3026 = vmatpush1.bf16.msra.mxu0 %v4304_v23  ;;  %3067 = vmatpush1.bf16.msra.mxu1 %v4306_v24  ;;  %v2482_v24 = vld [vmem:[#allocation3 + $0x6] ss:$8 sm:$0xf] }
 0x719   :  { %3027 = vmatprep.subr.bf16.mxu0 %v4312_v25  ;;  %3068 = vmatprep.subr.bf16.mxu1 %v4314_v26 }
 0x71c   :  { %3028 = vmatpush1.bf16.msra.mxu0 %v4316_v27  ;;  %3069 = vmatpush1.bf16.msra.mxu1 %v4318_v17 }
 0x71d   :  { %3029 = vmatprep.subr.bf16.mxu0 %v4324_v28  ;;  %3070 = vmatprep.subr.bf16.mxu1 %v4326_v29 }
 0x720   :  { %3030 = vmatpush1.bf16.msra.mxu0 %v4328_v43  ;;  %3071 = vmatpush1.bf16.msra.mxu1 %v4330_v44 }
 0x721   :  { %3031 = vmatprep.subr.bf16.mxu0 %v4338_v48  ;;  %3072 = vmatprep.subr.bf16.mxu1 %v4342_v50 }
 0x724   :  { %3032 = vmatpush1.bf16.msra.mxu0 %v4336_v47  ;;  %3073 = vmatpush1.bf16.msra.mxu1 %v4340_v49 }
 0x725   :  { %3033 = vmatprep.subr.bf16.mxu0 %v4344_v51  ;;  %3074 = vmatprep.subr.bf16.mxu1 %v4347_v52 }
 0x728   :  { %3034 = vmatpush1.bf16.msra.mxu0 %v4352_v53  ;;  %3075 = vmatpush1.bf16.msra.mxu1 %v4354_v54  ;;  %v2480_v54 = vld [vmem:[#allocation5] sm:$0x1] }
 0x7de   :  { %v2710_v2 = vpop.f32.mrb[28].mxu0  ;;  %v2751_v40 = vpop.f32.mrb[28].mxu1 }
 0x7df   :  { %v2712_v45 = vpop.f32.mrb[29].mxu0  ;;  %v2753_v61 = vpop.f32.mrb[29].mxu1 }
 0x7e0   :  { %v2762_v13 = vcombine.low %v2710_v2, %v2712_v45  ;;  %v2763_v14 = vcombine.low %v2751_v40, %v2753_v61  ;;  %v2714_v15 = vpop.f32.mrb[30].mxu0  ;;  %v2755_v16 = vpop.f32.mrb[30].mxu1 }
 0x7e1   :  { %v2715_v18 = vpop.f32.mrb[31].mxu0  ;;  %v2756_v19 = vpop.f32.mrb[31].mxu1 }
 0x7e2   :  { %v2770_v20 = vrot.slane %v2762_v13, %v4176_v46  ;;  %v2777_v21 = vrot.slane %v2763_v14, %v4176_v46 }
 0x7e4   :  { %v2778_v22 = vcombine.low %v2770_v20, %v2777_v21 }
 0x7e6   :  { %v2785_v23 = vrot.slane %v2778_v22, %v4176_v46 }
 0x7e8   :  { %v2787_v25 = vadd.f32 %v2785_v23, %v2482_v24 }
 0x7ea   :  { %v3477_v26 = vmul.f32 -1.442695, %v2787_v25  ;;  %v2795_v27 = vrot.slane %v2787_v25, 1  ;;  %v2806_v28 = vrot.slane %v2787_v25, 3  ;;  %v2803_v44 = vrot.slane %v2787_v25, 2 }
 0x7ec   :  { %3766 = vpow2.f32 %v3477_v26  ;;  %v3478_v17 = vmul.f32 -1.442695, %v2795_v27  ;;  %v3479_v29 = vmul.f32 -1.442695, %v2806_v28 }
 0x7ee   :  { %3768 = vpow2.f32 %v3478_v17 }
 0x7ef   :  { %3770 = vpow2.f32 %v3479_v29 }
 0x7f6   :  { %v3767_v43 = vpop.eup %3766 }
 0x7f7   :  { %v2791_v47 = vadd.f32 1.0, %v3767_v43 }
 0x7f8   :  { %v3769_v48 = vpop.eup %3768 }
 0x7f9   :  { %3772 = vrcp.f32 %v2791_v47  ;;  %v2800_v49 = vadd.f32 1.0, %v3769_v48  ;;  %v3771_v50 = vpop.eup %3770 }
 0x7fa   :  { %3774 = vtanh.f32 %v2803_v44  ;;  %v2811_v42 = vadd.f32 1.0, %v3771_v50 }
 0x7fb   :  { %3776 = vrcp.f32 %v2800_v49 }
 0x7fc   :  { %3778 = vrcp.f32 %v2811_v42 }
 0x803   :  { %v3773_v51 = vpop.eup %3772 }
 0x804   :  { %v3775_v52 = vpop.eup %3774 }
 0x805   :  { %v3777_v53 = vpop.eup %3776  ;;  %v2815_v55 = vmul.f32 %v3775_v52, %v3773_v51 }
 0x806   :  { %v2814_v37 = vmul.f32 %v3777_v53, %v2480_v54  ;;  %v3779_v57 = vpop.eup %3778 }
 0x808   :  { %v2816_v56 = vadd.f32 %v2815_v55, %v2814_v37 }
 0x80a   :  { %3780 = vtanh.f32 %v2816_v56  ;;  %2820 = vst [vmem:[#allocation5] sm:$0x1] %v2816_v56 }
 0x811   :  { %v2823_v15 = vld [vmem:[#allocation5] sm:$0x1] }
 0x814   :  { %v3781_v58 = vpop.eup %3780 }
 0x815   :  { %v2818_v38 = vmul.f32 %v3781_v58, %v3779_v57 }
 0x817   :  { %2821 = vst [vmem:[%s4511_s7 + $0x6] sm:$0x1] %v2818_v38  ;;  %2819 = vst [vmem:[#allocation4] sm:$0x1] %v2818_v38 }
 0x81e   :  { %v2822_v59 = vld [vmem:[#allocation4] sm:$0x1] }
 0x81f   :  { %v2826_v39 = vpack.c.bf16 %v2822_v59, %v2822_v59 }
 0x821   :  { %3052 = vmatmul.mubr.bf16.vlgmr.msra.gmra.mrb[32].mxu0 %v2826_v39  ;;  %3093 = vmatmul.mubr.bf16.vlgmr.msra.gmra.mrb[32].mxu1 %v2826_v39 }
 0x8f4   :  { %v3053_v60 = vpop.f32.mrb[32].mxu0  ;;  %v3094_v62 = vpop.f32.mrb[32].mxu1 }
 0x8f5   :  { %v3055_v63 = vpop.f32.mrb[33].mxu0  ;;  %v3096_v0 = vpop.f32.mrb[33].mxu1 }
 0x8f6   :  { %v3105_v1 = vcombine.low %v3053_v60, %v3055_v63  ;;  %v3106_v3 = vcombine.low %v3094_v62, %v3096_v0  ;;  %v3057_v4 = vpop.f32.mrb[34].mxu0  ;;  %v3098_v5 = vpop.f32.mrb[34].mxu1 }
 0x8f7   :  { %v3058_v6 = vpop.f32.mrb[35].mxu0  ;;  %v3099_v7 = vpop.f32.mrb[35].mxu1 }
 0x8f8   :  { %v3113_v8 = vrot.slane %v3105_v1, %v4176_v46  ;;  %v3120_v9 = vrot.slane %v3106_v3, %v4176_v46 }
 0x8fa   :  { %v3121_v10 = vcombine.low %v3113_v8, %v3120_v9 }
 0x8fc   :  { %v3128_v11 = vrot.slane %v3121_v10, %v4176_v46 }
 0x8fe   :  { %v3130_v30 = vadd.f32 %v3128_v11, %v2825_v12 }
 0x900   :  { %v3512_v31 = vmul.f32 -1.442695, %v3130_v30  ;;  %v3138_v32 = vrot.slane %v3130_v30, 1  ;;  %v3149_v34 = vrot.slane %v3130_v30, 3  ;;  %v3146_v36 = vrot.slane %v3130_v30, 2 }
 0x902   :  { %3782 = vpow2.f32 %v3512_v31  ;;  %v3513_v33 = vmul.f32 -1.442695, %v3138_v32  ;;  %v3514_v35 = vmul.f32 -1.442695, %v3149_v34 }
 0x904   :  { %3784 = vpow2.f32 %v3513_v33 }
 0x905   :  { %3786 = vpow2.f32 %v3514_v35 }
 0x90c   :  { %v3783_v41 = vpop.eup %3782 }
 0x90d   :  { %v3134_v2 = vadd.f32 1.0, %v3783_v41 }
 0x90e   :  { %v3785_v40 = vpop.eup %3784 }
 0x90f   :  { %3788 = vrcp.f32 %v3134_v2  ;;  %v3143_v45 = vadd.f32 1.0, %v3785_v40  ;;  %v3787_v61 = vpop.eup %3786 }
 0x910   :  { %3790 = vtanh.f32 %v3146_v36  ;;  %v3154_v16 = vadd.f32 1.0, %v3787_v61 }
 0x911   :  { %3792 = vrcp.f32 %v3143_v45 }
 0x912   :  { %3794 = vrcp.f32 %v3154_v16 }
 0x919   :  { %v3789_v46 = vpop.eup %3788 }
 0x91a   :  { %v3791_v13 = vpop.eup %3790 }
 0x91b   :  { %v3793_v14 = vpop.eup %3792  ;;  %v3158_v19 = vmul.f32 %v3791_v13, %v3789_v46 }
 0x91c   :  { %v3157_v18 = vmul.f32 %v3793_v14, %v2823_v15  ;;  %v3795_v22 = vpop.eup %3794 }
 0x91e   :  { %v3159_v20 = vadd.f32 %v3158_v19, %v3157_v18 }
 0x920   :  { %3796 = vtanh.f32 %v3159_v20  ;;  %3163 = vst [vmem:[#allocation5] sm:$0x1] %v3159_v20 }
 0x927   :  { %v3165_v21 = vld [vmem:[#allocation5] sm:$0x1] }
 0x928   :  { %3166 = vst [vmem:[#allocation14] sm:$0x1] %v3165_v21 }
 0x929   :  { %3887 = shalt.err (!%p3884_p5)
}
 0x92a   :  { %s3888_s13 = scalar_lea.hbm %s4512_s8, 16 }
 0x92b   :  { %p3889_p6 = scmp.ne.s32.totalorder %s4512_s8, %s3888_s13  ;;  %p3892_p7 = scmp.lt.u32.totalorder %s3888_s13, %s4512_s8 }
 0x92d   :  { %p3894_p8 = pnand %p3892_p7, %p3889_p6 }
 0x92f   :  { %3897 = shalt.err (!%p3894_p8)
}
 0x930   :  { %3178 = dma.vmem_to_hbm [thread:$0]  %s3176_s28, 16, %s4512_s8, [#allocation8]   ;;  %v3797_v23 = vpop.eup %3796 }
 0x931   :  { %v3161_v24 = vmul.f32 %v3797_v23, %v3795_v22 }
 0x933   :  { %3162 = vst [vmem:[#allocation4] sm:$0x1] %v3161_v24  ;;  %3164 = vst [vmem:[%s4511_s7 + $0x7] sm:$0x1] %v3161_v24 }
 0x934   :  { %3904 = dma.done.wait [#allocation8], 16  }
 0x935   :  { %3905 = vsyncadd [#allocation8], 4294967280 }
 0x936   :  { %3184 = vsyncpa [#allocation7], 1 }
 0x937   :  { %3185 = vsyncpa [#allocation12], 1 }
 0x938   :  { %3186 = vsyncpa [#allocation8], 1 }
 0x939   :  { %3187 = vsyncpa [#allocation9], 1 }

</bundles_post_ra>
